<compile_context>
chip_gen: v7x
topology: tpu7x:2x2x1
jax: 0.10.0
libtpu: 0.0.40
codegen_flags: <defaults>
</compile_context>

<pallas_src>
import functools

import jax
import jax.numpy as jnp
from jax import lax
from jax.experimental import pallas as pl
from jax.experimental.pallas import tpu as pltpu

IGNORE_INDEX = -100
_NEG_BIG = -1e30  # mask value for out-of-range vocab columns (exp underflows)


def _round_up(x: int, m: int) -> int:
  return ((x + m - 1) // m) * m


def _cdiv(a: int, b: int) -> int:
  return (a + b - 1) // b


def _vmem_capacity_bytes() -> int:
  """Per-core VMEM capacity; conservative 64 MiB fallback (v7x) if unknown."""
  try:
    info = pltpu.get_tpu_info()
    cap = getattr(info, "vmem_capacity_bytes", None)
    if cap:
      return int(cap)
  except Exception:
    pass
  return 64 * 1024 * 1024


def _largest_div128(n: int, cap: int):
  """Largest multiple of 128 that divides n and is <= cap (None if none)."""
  d = (min(cap, n) // 128) * 128
  while d >= 128:
    if n % d == 0:
      return d
    d -= 128
  return None


def _choose_tiles(bt: int, v: int, h: int, itemsize: int, budget: int):
  """Pick (tile_m, tile_v, tile_k) maximizing weight reuse within the budget."""
  # Token tile: lane dim of everything + MXU N dim -> multiple of 128, big.
  tile_m = min(1024, _round_up(max(bt, 1), 128))

  # Vocab tile: prefer a multiple of 128 (>=512) that divides V so the ragged
  # edge mask disappears; otherwise a big tile + in-kernel mask (no HBM pad).
  tile_v = None
  c = 1024
  while c >= 512:
    if v % c == 0:
      tile_v = c
      break
    c -= 128
  if tile_v is None:
    tile_v = min(1024, _round_up(v, 128))

  # Hidden (K) tile for the WEIGHT blocks only; activations stay full-H.
  if h <= 4096 or h % 128 != 0:
    tile_k = h
  else:
    tile_k = _largest_div128(h, 2048) or h

  def usage(tm, tv, tk):
    nk = _cdiv(h, tk)
    x_buf = 2 * h * tm * itemsize           # full-H activations, double-buffered
    w_buf = 2 * tv * tk * itemsize          # weight tiles, double-buffered
    acc = tm * tv * 4 if nk > 1 else 0      # f32 partial-logits accumulator
    xslice = tk * tm * itemsize if nk > 1 else 0
    cv = 256 if tv % 256 == 0 else 128
    return x_buf + w_buf + acc + xslice + 2 * cv * tm * 4

  # Shrink order: tile_k (doesn't hurt weight reuse), then tile_v (weight
  # traffic is tile_v-independent), then tile_m (sets arithmetic intensity).
  while usage(tile_m, tile_v, tile_k) > budget:
    if h % 128 == 0 and tile_k > 512:
      cand = _largest_div128(h, tile_k - 128)
      if cand and cand < tile_k:
        tile_k = cand
        continue
    if tile_v > 256:
      tile_v = max(256, _round_up(tile_v // 2, 128))
      continue
    if tile_m > 128:
      tile_m = max(128, _round_up(tile_m // 2, 128))
      continue
    break
  return tile_m, tile_v, tile_k


def _flce_kernel(x_ref, w_ref, t_ref, loss_ref, m_sc, l_sc, tgt_sc, *rest,
                 n_k: int, tile_k: int, tile_v: int, chunk_v: int,
                 v_total: int, mask_vocab: bool, ignore_index: int):
  """One (token_tile, vocab_tile, k_tile) step of fused linear cross-entropy."""
  j = pl.program_id(1)
  k = pl.program_id(2)
  acc_ref = rest[0] if n_k > 1 else None

  @pl.when(jnp.logical_and(j == 0, k == 0))
  def _():
    m_sc[...] = jnp.full(m_sc.shape, -jnp.inf, m_sc.dtype)
    l_sc[...] = jnp.zeros(l_sc.shape, l_sc.dtype)
    tgt_sc[...] = jnp.zeros(tgt_sc.shape, tgt_sc.dtype)

  # Resident (H, tile_m) activation block; slice the K rows for this k step.
  if n_k == 1:
    xt = x_ref[...]                                       # (H, tile_m)
  else:
    start = pl.multiple_of(k * tile_k, tile_k)
    xt = x_ref[pl.ds(start, tile_k), :]                   # (tile_k, tile_m)
  tile_m = xt.shape[1]
  tgt_row = t_ref[...].reshape(1, tile_m)                 # (1, tile_m) int32

  def epilogue(logits_c, row_base):
    # logits_c: (chunk_v, tile_m) f32, row_base: global vocab row of its row 0.
    vloc = lax.broadcasted_iota(jnp.int32, logits_c.shape, 0)
    if mask_vocab:
      # Mask BEFORE max/exp/target-select so ragged-edge garbage never
      # propagates (correctness requirement for unpadded weights).
      logits_c = jnp.where(vloc < v_total - row_base, logits_c, _NEG_BIG)
    is_tgt = vloc == (tgt_row - row_base)                 # <=1 hit per token
    tgt_sc[...] += jnp.sum(jnp.where(is_tgt, logits_c, 0.0), axis=0,
                           keepdims=True)
    # Online logsumexp over the vocab (sublane) axis; tokens stay on lanes.
    m_new = jnp.maximum(m_sc[...], jnp.max(logits_c, axis=0, keepdims=True))
    l_sc[...] = (l_sc[...] * jnp.exp(m_sc[...] - m_new)
                 + jnp.sum(jnp.exp(logits_c - m_new), axis=0, keepdims=True))
    m_sc[...] = m_new

  # Chunked dot + fused epilogue over the vocab (sublane) axis.
  for c in range(tile_v // chunk_v):
    r0 = c * chunk_v
    w_c = w_ref[pl.ds(r0, chunk_v), :]                    # (chunk_v, tile_k)
    partial = jnp.dot(w_c, xt, preferred_element_type=jnp.float32)
    row_base = j * tile_v + r0
    if n_k == 1:
      epilogue(partial, row_base)
    else:
      @pl.when(k == 0)
      def _(p=partial, r=r0):
        acc_ref[pl.ds(r, chunk_v), :] = p

      @pl.when(jnp.logical_and(k > 0, k < n_k - 1))
      def _(p=partial, r=r0):
        acc_ref[pl.ds(r, chunk_v), :] += p

      @pl.when(k == n_k - 1)
      def _(p=partial, r=r0, rb=row_base):
        epilogue(acc_ref[pl.ds(r, chunk_v), :] + p, rb)

  @pl.when(jnp.logical_and(j == pl.num_programs(1) - 1,
                           k == pl.num_programs(2) - 1))
  def _():
    lse = m_sc[...] + jnp.log(l_sc[...])
    valid = tgt_row != ignore_index
    # Lane-dense (tokens on lanes) unmasked store of the per-token loss.
    loss_ref[...] = jnp.where(valid, lse - tgt_sc[...], 0.0).reshape(
        1, 1, tile_m)


def fused_linear_cross_entropy(inp, weight, target, *,
                               ignore_index: int = IGNORE_INDEX,
                               tile_m: int | None = None,
                               tile_v: int | None = None,
                               tile_k: int | None = None):
  """Mean CE loss of (inp @ weight.T) vs target, ignoring ignore_index."""
  BT, H = inp.shape
  V, H2 = weight.shape
  assert H == H2
  itemsize = jnp.dtype(inp.dtype).itemsize

  # Generation-aware VMEM budgeting (v7x: ~40 MiB tiles / 48 MiB limit on a
  # 64 MiB core; v5e/v6e: ~80 MiB tiles on 128 MiB).
  cap = _vmem_capacity_bytes()
  budget = max(min(int(cap * 0.62), cap - 20 * 1024 * 1024), 24 * 1024 * 1024)

  auto_m, auto_v, auto_k = _choose_tiles(BT, V, H, itemsize, budget)
  tile_m = tile_m or auto_m
  tile_v = tile_v or auto_v
  tile_k = min(tile_k or auto_k, H)

  n_m = _cdiv(BT, tile_m)
  n_v = _cdiv(V, tile_v)
  n_k = _cdiv(H, tile_k)
  assert n_k == 1 or H % tile_k == 0, "tile_k must divide H when K-tiling"
  mask_vocab = (V % tile_v) != 0
  chunk_v = 256 if tile_v % 256 == 0 else (128 if tile_v % 128 == 0 else tile_v)
  assert tile_v % chunk_v == 0

  # Only the (tiny) target vector is padded; activation / weight ragged edges
  # are handled in-kernel (no full weight copy in HBM).
  BT_pad = n_m * tile_m
  tgt = target.astype(jnp.int32)
  if BT_pad != BT:
    tgt = jnp.pad(tgt, (0, BT_pad - BT), constant_values=ignore_index)
  tgt3d = tgt.reshape(n_m, 1, tile_m)

  # One-time transpose of the (small) activations so the matmul RHS arrives
  # with K on sublanes / tokens on lanes (no in-kernel transpose).
  x_t = inp.T                                              # (H, BT)

  kernel = functools.partial(
      _flce_kernel, n_k=n_k, tile_k=tile_k, tile_v=tile_v, chunk_v=chunk_v,
      v_total=V, mask_vocab=mask_vocab, ignore_index=ignore_index)

  scratch = [
      pltpu.VMEM((1, tile_m), jnp.float32),   # running max
      pltpu.VMEM((1, tile_m), jnp.float32),   # running sum-exp
      pltpu.VMEM((1, tile_m), jnp.float32),   # target logit
  ]
  if n_k > 1:
    scratch.append(pltpu.VMEM((tile_v, tile_m), jnp.float32))  # partial logits

  vmem_limit = int(min(budget + 8 * 1024 * 1024, int(cap * 0.80)))
  vmem_limit = max(vmem_limit, 32 * 1024 * 1024)

  per_token = pl.pallas_call(
      kernel,
      out_shape=jax.ShapeDtypeStruct((n_m, 1, tile_m), jnp.float32),
      grid_spec=pltpu.PrefetchScalarGridSpec(
          num_scalar_prefetch=0,
          grid=(n_m, n_v, n_k),
          in_specs=[
              # Full-H activation block, resident across the whole vocab sweep.
              pl.BlockSpec((H, tile_m), lambda i, j, k: (0, i)),
              # Weight tiles: the only repeated HBM stream (reused tile_m x).
              pl.BlockSpec((tile_v, tile_k), lambda i, j, k: (j, k)),
              pl.BlockSpec((1, 1, tile_m), lambda i, j, k: (i, 0, 0)),
          ],
          out_specs=pl.BlockSpec((1, 1, tile_m), lambda i, j, k: (i, 0, 0)),
          scratch_shapes=scratch,
      ),
      compiler_params=pltpu.CompilerParams(
          dimension_semantics=("parallel", "arbitrary", "arbitrary"),
          vmem_limit_bytes=vmem_limit),
  )(x_t, weight, tgt3d)

  per_token = per_token.reshape(BT_pad)[:BT]

  # Glue: mean over non-ignored tokens (reduction='mean' with ignore_index).
  valid = (target != ignore_index)
  n_valid = jnp.sum(valid.astype(jnp.float32))
  return jnp.sum(per_token) / jnp.maximum(n_valid, 1.0)


def _reference(inp, weight, target, ignore_index=IGNORE_INDEX):
  logits = jnp.dot(inp.astype(jnp.float32), weight.astype(jnp.float32).T)
  lse = jax.nn.logsumexp(logits, axis=-1)
  safe_t = jnp.where(target == ignore_index, 0, target)
  tgt_logit = jnp.take_along_axis(logits, safe_t[:, None], axis=-1)[:, 0]
  loss = lse - tgt_logit
  valid = (target != ignore_index)
  return jnp.sum(jnp.where(valid, loss, 0.0)) / jnp.maximum(
      jnp.sum(valid.astype(jnp.float32)), 1.0)


if __name__ == "__main__":
  key = jax.random.PRNGKey(0)

  def make_case(k, bt, h, v, p_ignore=0.2):
    k1, k2, k3, k4 = jax.random.split(k, 4)
    x = (jax.random.normal(k1, (bt, h), jnp.float32) * 0.05).astype(jnp.bfloat16)
    w = (jax.random.normal(k2, (v, h), jnp.float32) * 0.05).astype(jnp.bfloat16)
    t = jax.random.randint(k3, (bt,), 0, v, jnp.int32)
    t = jnp.where(jax.random.bernoulli(k4, p_ignore, (bt,)), IGNORE_INDEX, t)
    return x, w, t

  k_a, k_b = jax.random.split(key)

  # Case A: ragged token and vocab edges (in-kernel mask path), no K-tiling.
  inp, w, tgt = make_case(k_a, 96, 128, 500)
  out_a = jax.block_until_ready(fused_linear_cross_entropy(inp, w, tgt))
  ref_a = _reference(inp, w, tgt)
  assert jnp.allclose(out_a, ref_a, atol=2e-2, rtol=2e-2), (out_a, ref_a)

  # Case B: hidden (K) tiling path with the f32 partial-logits accumulator.
  inp, w, tgt = make_case(k_b, 64, 256, 384)
  out_b = jax.block_until_ready(
      fused_linear_cross_entropy(inp, w, tgt, tile_k=128))
  ref_b = _reference(inp, w, tgt)
  assert jnp.allclose(out_b, ref_b, atol=2e-2, rtol=2e-2), (out_b, ref_b)

  print("KERNEL_OK")
</pallas_src>

<mosaic_0001>
module attributes {stable_mosaic.version = 11 : i64} {
  func.func @_flce_kernel(%arg0: i32, %arg1: i32, %arg2: i32, %arg3: memref<128x128xbf16, #tpu.memory_space<vmem>>, %arg4: memref<512x128xbf16, #tpu.memory_space<vmem>>, %arg5: memref<1x1x128xi32, #tpu.memory_space<vmem>>, %arg6: memref<1x1x128xf32, #tpu.memory_space<vmem>>, %arg7: memref<1x128xf32, #tpu.memory_space<vmem>>, %arg8: memref<1x128xf32, #tpu.memory_space<vmem>>, %arg9: memref<1x128xf32, #tpu.memory_space<vmem>>) attributes {dimension_semantics = [#tpu.dimension_semantics<parallel>, #tpu.dimension_semantics<arbitrary>, #tpu.dimension_semantics<arbitrary>], iteration_bounds = array<i64: 1, 1, 1>, scalar_prefetch = 0 : i64, scratch_operands = 3 : i64, tpu.core_type = #tpu.core_type<tc>, window_params = [{transform_indices = @transform_0, window_bounds = array<i64: 128, 128>}, {transform_indices = @transform_1, window_bounds = array<i64: 512, 128>}, {transform_indices = @transform_2, window_bounds = array<i64: 1, 1, 128>}, {transform_indices = @transform_3, window_bounds = array<i64: 1, 1, 128>}]} {
    %c0_i32 = arith.constant 0 : i32
    %0 = arith.cmpi eq, %arg1, %c0_i32 : i32
    %c0_i32_0 = arith.constant 0 : i32
    %1 = arith.cmpi eq, %arg2, %c0_i32_0 : i32
    %2 = arith.andi %0, %1 : i1
    %3 = arith.extui %2 : i1 to i32
    %c0_i32_1 = arith.constant 0 : i32
    %4 = arith.cmpi ne, %3, %c0_i32_1 : i32
    scf.if %4 {
      %cst_54 = arith.constant 0xFF800000 : f32
      %89 = vector.broadcast %cst_54 : f32 to vector<1x128xf32>
      %c0_55 = arith.constant 0 : index
      %c0_56 = arith.constant 0 : index
      %90 = vector.load %arg7[%c0_55, %c0_56] : memref<1x128xf32, #tpu.memory_space<vmem>>, vector<1x128xf32>
      tpu.vector_store %arg7[%c0_55, %c0_56], %89 {strides = array<i32>} : memref<1x128xf32, #tpu.memory_space<vmem>>, vector<1x128xf32>,
      %cst_57 = arith.constant 0.000000e+00 : f32
      %91 = vector.broadcast %cst_57 : f32 to vector<1x128xf32>
      %c0_58 = arith.constant 0 : index
      %c0_59 = arith.constant 0 : index
      %92 = vector.load %arg8[%c0_58, %c0_59] : memref<1x128xf32, #tpu.memory_space<vmem>>, vector<1x128xf32>
      tpu.vector_store %arg8[%c0_58, %c0_59], %91 {strides = array<i32>} : memref<1x128xf32, #tpu.memory_space<vmem>>, vector<1x128xf32>,
      %cst_60 = arith.constant 0.000000e+00 : f32
      %93 = vector.broadcast %cst_60 : f32 to vector<1x128xf32>
      %c0_61 = arith.constant 0 : index
      %c0_62 = arith.constant 0 : index
      %94 = vector.load %arg9[%c0_61, %c0_62] : memref<1x128xf32, #tpu.memory_space<vmem>>, vector<1x128xf32>
      tpu.vector_store %arg9[%c0_61, %c0_62], %93 {strides = array<i32>} : memref<1x128xf32, #tpu.memory_space<vmem>>, vector<1x128xf32>,
    } else {
    }
    %c0 = arith.constant 0 : index
    %c0_2 = arith.constant 0 : index
    %5 = vector.load %arg3[%c0, %c0_2] : memref<128x128xbf16, #tpu.memory_space<vmem>>, vector<128x128xbf16>
    %c0_3 = arith.constant 0 : index
    %c0_4 = arith.constant 0 : index
    %c0_5 = arith.constant 0 : index
    %6 = vector.load %arg5[%c0_3, %c0_4, %c0_5] : memref<1x1x128xi32, #tpu.memory_space<vmem>>, vector<1x1x128xi32>
    %7 = vector.shape_cast %6 : vector<1x1x128xi32> to vector<1x128xi32>
    %c0_6 = arith.constant 0 : index
    %c0_7 = arith.constant 0 : index
    %8 = vector.load %arg4[%c0_6, %c0_7] : memref<512x128xbf16, #tpu.memory_space<vmem>>, vector<256x128xbf16>
    %cst = arith.constant dense<0.000000e+00> : vector<256x128xf32>
    %9 = tpu.matmul %8, %5, %cst {dimension_numbers = #tpu.dot_dimension_numbers<[1], [0], [0], [1], [0, 0, 1, 1], [], []>} : vector<256x128xbf16>, vector<128x128xbf16>, vector<256x128xf32> -> vector<256x128xf32>
    %c512_i32 = arith.constant 512 : i32
    %10 = arith.muli %arg1, %c512_i32 : i32
    %c0_i32_8 = arith.constant 0 : i32
    %11 = arith.addi %10, %c0_i32_8 : i32
    %12 = tpu.iota {dimensions = array<i32: 0>} : vector<256x128xi32>
    %c500_i32 = arith.constant 500 : i32
    %13 = arith.subi %c500_i32, %11 : i32
    %14 = vector.broadcast %13 : i32 to vector<256x128xi32>
    %15 = arith.cmpi slt, %12, %14 : vector<256x128xi32>
    %cst_9 = arith.constant -1.000000e+30 : f32
    %16 = vector.broadcast %cst_9 : f32 to vector<256x128xf32>
    %17 = arith.select %15, %9, %16 : vector<256x128xi1>, vector<256x128xf32>
    %18 = vector.broadcast %11 : i32 to vector<1x128xi32>
    %19 = arith.subi %7, %18 : vector<1x128xi32>
    %20 = vector.broadcast %19 : vector<1x128xi32> to vector<256x128xi32>
    %21 = arith.cmpi eq, %12, %20 : vector<256x128xi32>
    %c0_10 = arith.constant 0 : index
    %c0_11 = arith.constant 0 : index
    %22 = vector.load %arg9[%c0_10, %c0_11] : memref<1x128xf32, #tpu.memory_space<vmem>>, vector<1x128xf32>
    %cst_12 = arith.constant 0.000000e+00 : f32
    %23 = vector.broadcast %cst_12 : f32 to vector<256x128xf32>
    %24 = arith.select %21, %17, %23 : vector<256x128xi1>, vector<256x128xf32>
    %cst_13 = arith.constant dense<0.000000e+00> : vector<128xf32>
    %25 = vector.multi_reduction <add>, %24, %cst_13 [0] : vector<256x128xf32> to vector<128xf32>
    %26 = vector.shape_cast %25 : vector<128xf32> to vector<1x128xf32>
    %27 = arith.addf %22, %26 : vector<1x128xf32>
    %c0_14 = arith.constant 0 : index
    %c0_15 = arith.constant 0 : index
    %28 = vector.load %arg9[%c0_14, %c0_15] : memref<1x128xf32, #tpu.memory_space<vmem>>, vector<1x128xf32>
    tpu.vector_store %arg9[%c0_14, %c0_15], %27 {strides = array<i32>} : memref<1x128xf32, #tpu.memory_space<vmem>>, vector<1x128xf32>,
    %c0_16 = arith.constant 0 : index
    %c0_17 = arith.constant 0 : index
    %29 = vector.load %arg7[%c0_16, %c0_17] : memref<1x128xf32, #tpu.memory_space<vmem>>, vector<1x128xf32>
    %cst_18 = arith.constant dense<0xFF800000> : vector<128xf32>
    %30 = vector.multi_reduction <maximumf>, %17, %cst_18 [0] : vector<256x128xf32> to vector<128xf32>
    %31 = vector.shape_cast %30 : vector<128xf32> to vector<1x128xf32>
    %32 = arith.maximumf %29, %31 : vector<1x128xf32>
    %c0_19 = arith.constant 0 : index
    %c0_20 = arith.constant 0 : index
    %33 = vector.load %arg8[%c0_19, %c0_20] : memref<1x128xf32, #tpu.memory_space<vmem>>, vector<1x128xf32>
    %c0_21 = arith.constant 0 : index
    %c0_22 = arith.constant 0 : index
    %34 = vector.load %arg7[%c0_21, %c0_22] : memref<1x128xf32, #tpu.memory_space<vmem>>, vector<1x128xf32>
    %35 = arith.subf %34, %32 : vector<1x128xf32>
    %36 = math.exp %35 : vector<1x128xf32>
    %37 = arith.mulf %33, %36 : vector<1x128xf32>
    %38 = vector.broadcast %32 : vector<1x128xf32> to vector<256x128xf32>
    %39 = arith.subf %17, %38 : vector<256x128xf32>
    %40 = math.exp %39 : vector<256x128xf32>
    %cst_23 = arith.constant dense<0.000000e+00> : vector<128xf32>
    %41 = vector.multi_reduction <add>, %40, %cst_23 [0] : vector<256x128xf32> to vector<128xf32>
    %42 = vector.shape_cast %41 : vector<128xf32> to vector<1x128xf32>
    %43 = arith.addf %37, %42 : vector<1x128xf32>
    %c0_24 = arith.constant 0 : index
    %c0_25 = arith.constant 0 : index
    %44 = vector.load %arg8[%c0_24, %c0_25] : memref<1x128xf32, #tpu.memory_space<vmem>>, vector<1x128xf32>
    tpu.vector_store %arg8[%c0_24, %c0_25], %43 {strides = array<i32>} : memref<1x128xf32, #tpu.memory_space<vmem>>, vector<1x128xf32>,
    %c0_26 = arith.constant 0 : index
    %c0_27 = arith.constant 0 : index
    %45 = vector.load %arg7[%c0_26, %c0_27] : memref<1x128xf32, #tpu.memory_space<vmem>>, vector<1x128xf32>
    tpu.vector_store %arg7[%c0_26, %c0_27], %32 {strides = array<i32>} : memref<1x128xf32, #tpu.memory_space<vmem>>, vector<1x128xf32>,
    %c256 = arith.constant 256 : index
    %c0_28 = arith.constant 0 : index
    %46 = vector.load %arg4[%c256, %c0_28] : memref<512x128xbf16, #tpu.memory_space<vmem>>, vector<256x128xbf16>
    %cst_29 = arith.constant dense<0.000000e+00> : vector<256x128xf32>
    %47 = tpu.matmul %46, %5, %cst_29 {dimension_numbers = #tpu.dot_dimension_numbers<[1], [0], [0], [1], [0, 0, 1, 1], [], []>} : vector<256x128xbf16>, vector<128x128xbf16>, vector<256x128xf32> -> vector<256x128xf32>
    %c512_i32_30 = arith.constant 512 : i32
    %48 = arith.muli %arg1, %c512_i32_30 : i32
    %c256_i32 = arith.constant 256 : i32
    %49 = arith.addi %48, %c256_i32 : i32
    %50 = tpu.iota {dimensions = array<i32: 0>} : vector<256x128xi32>
    %c500_i32_31 = arith.constant 500 : i32
    %51 = arith.subi %c500_i32_31, %49 : i32
    %52 = vector.broadcast %51 : i32 to vector<256x128xi32>
    %53 = arith.cmpi slt, %50, %52 : vector<256x128xi32>
    %cst_32 = arith.constant -1.000000e+30 : f32
    %54 = vector.broadcast %cst_32 : f32 to vector<256x128xf32>
    %55 = arith.select %53, %47, %54 : vector<256x128xi1>, vector<256x128xf32>
    %56 = vector.broadcast %49 : i32 to vector<1x128xi32>
    %57 = arith.subi %7, %56 : vector<1x128xi32>
    %58 = vector.broadcast %57 : vector<1x128xi32> to vector<256x128xi32>
    %59 = arith.cmpi eq, %50, %58 : vector<256x128xi32>
    %c0_33 = arith.constant 0 : index
    %c0_34 = arith.constant 0 : index
    %60 = vector.load %arg9[%c0_33, %c0_34] : memref<1x128xf32, #tpu.memory_space<vmem>>, vector<1x128xf32>
    %cst_35 = arith.constant 0.000000e+00 : f32
    %61 = vector.broadcast %cst_35 : f32 to vector<256x128xf32>
    %62 = arith.select %59, %55, %61 : vector<256x128xi1>, vector<256x128xf32>
    %cst_36 = arith.constant dense<0.000000e+00> : vector<128xf32>
    %63 = vector.multi_reduction <add>, %62, %cst_36 [0] : vector<256x128xf32> to vector<128xf32>
    %64 = vector.shape_cast %63 : vector<128xf32> to vector<1x128xf32>
    %65 = arith.addf %60, %64 : vector<1x128xf32>
    %c0_37 = arith.constant 0 : index
    %c0_38 = arith.constant 0 : index
    %66 = vector.load %arg9[%c0_37, %c0_38] : memref<1x128xf32, #tpu.memory_space<vmem>>, vector<1x128xf32>
    tpu.vector_store %arg9[%c0_37, %c0_38], %65 {strides = array<i32>} : memref<1x128xf32, #tpu.memory_space<vmem>>, vector<1x128xf32>,
    %c0_39 = arith.constant 0 : index
    %c0_40 = arith.constant 0 : index
    %67 = vector.load %arg7[%c0_39, %c0_40] : memref<1x128xf32, #tpu.memory_space<vmem>>, vector<1x128xf32>
    %cst_41 = arith.constant dense<0xFF800000> : vector<128xf32>
    %68 = vector.multi_reduction <maximumf>, %55, %cst_41 [0] : vector<256x128xf32> to vector<128xf32>
    %69 = vector.shape_cast %68 : vector<128xf32> to vector<1x128xf32>
    %70 = arith.maximumf %67, %69 : vector<1x128xf32>
    %c0_42 = arith.constant 0 : index
    %c0_43 = arith.constant 0 : index
    %71 = vector.load %arg8[%c0_42, %c0_43] : memref<1x128xf32, #tpu.memory_space<vmem>>, vector<1x128xf32>
    %c0_44 = arith.constant 0 : index
    %c0_45 = arith.constant 0 : index
    %72 = vector.load %arg7[%c0_44, %c0_45] : memref<1x128xf32, #tpu.memory_space<vmem>>, vector<1x128xf32>
    %73 = arith.subf %72, %70 : vector<1x128xf32>
    %74 = math.exp %73 : vector<1x128xf32>
    %75 = arith.mulf %71, %74 : vector<1x128xf32>
    %76 = vector.broadcast %70 : vector<1x128xf32> to vector<256x128xf32>
    %77 = arith.subf %55, %76 : vector<256x128xf32>
    %78 = math.exp %77 : vector<256x128xf32>
    %cst_46 = arith.constant dense<0.000000e+00> : vector<128xf32>
    %79 = vector.multi_reduction <add>, %78, %cst_46 [0] : vector<256x128xf32> to vector<128xf32>
    %80 = vector.shape_cast %79 : vector<128xf32> to vector<1x128xf32>
    %81 = arith.addf %75, %80 : vector<1x128xf32>
    %c0_47 = arith.constant 0 : index
    %c0_48 = arith.constant 0 : index
    %82 = vector.load %arg8[%c0_47, %c0_48] : memref<1x128xf32, #tpu.memory_space<vmem>>, vector<1x128xf32>
    tpu.vector_store %arg8[%c0_47, %c0_48], %81 {strides = array<i32>} : memref<1x128xf32, #tpu.memory_space<vmem>>, vector<1x128xf32>,
    %c0_49 = arith.constant 0 : index
    %c0_50 = arith.constant 0 : index
    %83 = vector.load %arg7[%c0_49, %c0_50] : memref<1x128xf32, #tpu.memory_space<vmem>>, vector<1x128xf32>
    tpu.vector_store %arg7[%c0_49, %c0_50], %70 {strides = array<i32>} : memref<1x128xf32, #tpu.memory_space<vmem>>, vector<1x128xf32>,
    %c0_i32_51 = arith.constant 0 : i32
    %84 = arith.cmpi eq, %arg1, %c0_i32_51 : i32
    %c0_i32_52 = arith.constant 0 : i32
    %85 = arith.cmpi eq, %arg2, %c0_i32_52 : i32
    %86 = arith.andi %84, %85 : i1
    %87 = arith.extui %86 : i1 to i32
    %c0_i32_53 = arith.constant 0 : i32
    %88 = arith.cmpi ne, %87, %c0_i32_53 : i32
    scf.if %88 {
      %c0_54 = arith.constant 0 : index
      %c0_55 = arith.constant 0 : index
      %89 = vector.load %arg7[%c0_54, %c0_55] : memref<1x128xf32, #tpu.memory_space<vmem>>, vector<1x128xf32>
      %c0_56 = arith.constant 0 : index
      %c0_57 = arith.constant 0 : index
      %90 = vector.load %arg8[%c0_56, %c0_57] : memref<1x128xf32, #tpu.memory_space<vmem>>, vector<1x128xf32>
      %91 = math.log %90 : vector<1x128xf32>
      %92 = arith.addf %89, %91 : vector<1x128xf32>
      %c-100_i32 = arith.constant -100 : i32
      %93 = vector.broadcast %c-100_i32 : i32 to vector<1x128xi32>
      %94 = arith.cmpi ne, %7, %93 : vector<1x128xi32>
      %c0_58 = arith.constant 0 : index
      %c0_59 = arith.constant 0 : index
      %95 = vector.load %arg9[%c0_58, %c0_59] : memref<1x128xf32, #tpu.memory_space<vmem>>, vector<1x128xf32>
      %96 = arith.subf %92, %95 : vector<1x128xf32>
      %cst_60 = arith.constant 0.000000e+00 : f32
      %97 = vector.broadcast %cst_60 : f32 to vector<1x128xf32>
      %98 = arith.select %94, %96, %97 : vector<1x128xi1>, vector<1x128xf32>
      %99 = vector.shape_cast %98 : vector<1x128xf32> to vector<1x1x128xf32>
      %c0_61 = arith.constant 0 : index
      %c0_62 = arith.constant 0 : index
      %c0_63 = arith.constant 0 : index
      %100 = vector.load %arg6[%c0_61, %c0_62, %c0_63] : memref<1x1x128xf32, #tpu.memory_space<vmem>>, vector<1x1x128xf32>
      tpu.vector_store %arg6[%c0_61, %c0_62, %c0_63], %99 {strides = array<i32>} : memref<1x1x128xf32, #tpu.memory_space<vmem>>, vector<1x1x128xf32>,
    } else {
    }
    return
  }
  func.func @transform_0(%arg0: i32, %arg1: i32, %arg2: i32) -> (i32, i32) {
    %c0_i32 = arith.constant 0 : i32
    %c0_i32_0 = arith.constant 0 : i32
    return %c0_i32, %arg0 : i32, i32
  }
  func.func @transform_1(%arg0: i32, %arg1: i32, %arg2: i32) -> (i32, i32) {
    %c0_i32 = arith.constant 0 : i32
    return %arg1, %arg2 : i32, i32
  }
  func.func @transform_2(%arg0: i32, %arg1: i32, %arg2: i32) -> (i32, i32, i32) {
    %c0_i32 = arith.constant 0 : i32
    %c0_i32_0 = arith.constant 0 : i32
    %c0_i32_1 = arith.constant 0 : i32
    return %arg0, %c0_i32, %c0_i32_0 : i32, i32, i32
  }
  func.func @transform_3(%arg0: i32, %arg1: i32, %arg2: i32) -> (i32, i32, i32) {
    %c0_i32 = arith.constant 0 : i32
    %c0_i32_0 = arith.constant 0 : i32
    %c0_i32_1 = arith.constant 0 : i32
    return %arg0, %c0_i32, %c0_i32_0 : i32, i32, i32
  }
}

</mosaic_0001>

<bundles_post_ra>
// kernel: tpu_custom_call.1
= control target key start
LH: loop header
LB: loop body
LE: loop exit
PB: predicated region body
PF: predicated region fallthrough
CT: control target
= control target key end

     0   :  { %8 = vsyncpa [#allocation6], 0  ;;  %s2952_s0 = inlined_call_operand.vmem [shape: bf16[128,96], index: 0, kind: input, shape index: {}]   ;;  %s2953_s1 = inlined_call_operand.hbm [shape: bf16[500,128], index: 1, kind: input, shape index: {}]   ;;  %s2954_s2 = inlined_call_operand.vmem [shape: s32[1,1,128], index: 2, kind: input, shape index: {}]   ;;  %s2955_s3 = inlined_call_operand.hbm [shape: f32[1,1,128], index: 3, kind: output, shape index: {}]  }
   0x1   :  { %9 = vsyncpa [#allocation7], 0 }
   0x2   :  { %16 = vsyncadd [#allocation6], 64  ;;  %s1882_s12 = smov [#allocation5]   ;;  %s1834_s16 = scalar_lea.hbm %s2953_s1, 4032 }
   0x3   :  { %s17_s13 = sshll.u32 %s1882_s12, 4  ;;  %p1835_p0 = scmp.ne.s32.totalorder %s2953_s1, %s1834_s16  ;;  %s18_s13 = int_to_ptr.vmem [resolvable:$true] %s17_s13 }
   0x4   :  { %p1838_p1 = scmp.lt.u32.totalorder %s1834_s16, %s2953_s1 }
   0x6   :  { %p1840_p2 = pnand %p1838_p1, %p1835_p0 }
   0x8   :  { %1843 = shalt.err (!%p1840_p2)
}
   0x9   :  { %s1844_s21 = scalar_lea.vmem %s18_s13, 4032  ;;  %s1848_s22 = scalar_lea.vmem %s18_s13, 4096 }
   0xa   :  { %p1845_p3 = scmp.ne.s32.totalorder %s18_s13, %s1844_s21  ;;  %p1849_p4 = scmp.lt.s32.totalorder %s18_s13, %s18_s13 }
   0xb   :  { %p1850_p5 = scmp.lt.s32.totalorder %s1848_s22, %s1844_s21 }
   0xd   :  { %p1851_p6 = por %p1850_p5, %p1849_p4 }
   0xf   :  { %p1852_p7 = pnand %p1851_p6, %p1845_p3 }
  0x11   :  { %1855 = shalt.err (!%p1852_p7)
}
  0x12   :  { %s1883_s23 = smov 64   ;;  %s1884_s24 = smov 4  }
  0x13   :  { %23 = dma.hbm_to_vmem [thread:$0]  %s2953_s1, 4032, %s18_s13, [#allocation6], %s1883_s23, %s1883_s23, %s1884_s24  }
  0x14   :  { %1878 = dma.done.wait [#allocation6], 4096  }
  0x15   :  { %1879 = vsyncadd [#allocation6], 4294963200  ;;  %v1659_v0 = vld [vmem:[%s2952_s0] sm:$0xff]   ;;  %v1660_v1 = vld [vmem:[%s2952_s0 + $0x8] sm:$0xff]   ;;  %v1885_v40 = vmov -inf   ;;  %v2956_v41 = vmov 0.0   ;;  %v394_v42 = vlaneseq }
  0x16   :  { %1557 = vmatprep.subr.bf16.mxu0 %v1659_v0  ;;  %1605 = vmatprep.subr.bf16.mxu1 %v1659_v0  ;;  %v1661_v2 = vld [vmem:[%s2952_s0 + $0x10] sm:$0xff]   ;;  %v1662_v3 = vld [vmem:[%s2952_s0 + $0x18] sm:$0xff]   ;;  %v1667_v4 = vld [vmem:[#allocation5] sm:$0xff]   ;;  %36 = vst [vmem:[#allocation2] sm:$0x1] %v1885_v40  ;;  %s1887_s16 = smov [#allocation8]  }
  0x17   :  { %1558 = vmatpush3.bf16.msra.mxu0 %v1659_v0  ;;  %1606 = vmatpush3.bf16.msra.mxu1 %v1659_v0  ;;  %v1668_v5 = vld [vmem:[#allocation5 + $0x80] sm:$0xff]   ;;  %v1665_v8 = vld [vmem:[%s2952_s0 + $0x30] sm:$0xff]   ;;  %v1666_v9 = vld [vmem:[%s2952_s0 + $0x38] sm:$0xff]   ;;  %37 = vst [vmem:[#allocation3] sm:$0x1] %v2956_v41  ;;  %v1949_v44 = vshrl.u32 %v394_v42, 7 }
  0x18   :  { %1559 = vmatprep.subr.bf16.mxu0 %v1660_v1  ;;  %1607 = vmatprep.subr.bf16.mxu1 %v1660_v1  ;;  %v1663_v6 = vld [vmem:[%s2952_s0 + $0x20] sm:$0xff]   ;;  %v1664_v7 = vld [vmem:[%s2952_s0 + $0x28] sm:$0xff]   ;;  %v1671_v12 = vld [vmem:[#allocation5 + $0x10] sm:$0xff]   ;;  %38 = vst [vmem:[#allocation4] sm:$0x1] %v2956_v41  ;;  %s1459_s17 = sshll.u32 %s1887_s16, 4  ;;  %s1460_s17 = int_to_ptr.vmem [resolvable:$true] %s1459_s17 }
  0x19   :  { %1573 = vmatprep.mubr.bf16.mxu0 %v1667_v4  ;;  %1621 = vmatprep.mubr.bf16.mxu1 %v1668_v5  ;;  %v1669_v10 = vld [vmem:[#allocation5 + $0x8] sm:$0xff]   ;;  %v1672_v13 = vld [vmem:[#allocation5 + $0x90] sm:$0xff]   ;;  %v1673_v14 = vld [vmem:[#allocation5 + $0x18] sm:$0xff]   ;;  %v1952_v46 = vsub.s32 0, %v1949_v44  ;;  %v396_v49 = vadd.s32 8, %v1949_v44  ;;  %v397_v50 = vadd.s32 16, %v1949_v44  ;;  %p1861_p9 = scmp.lt.s32.totalorder %s1460_s17, %s1460_s17 }
  0x1a   :  { %v1670_v11 = vld [vmem:[#allocation5 + $0x88] sm:$0xff]   ;;  %v1674_v15 = vld [vmem:[#allocation5 + $0x98] sm:$0xff]   ;;  %v1675_v16 = vld [vmem:[#allocation5 + $0x20] sm:$0xff]   ;;  %v398_v51 = vadd.s32 24, %v1949_v44  ;;  %v1972_v54 = vadd.s32 48, %v1949_v44  ;;  %v399_v57 = vadd.s32 32, %v1949_v44 }
  0x1b   :  { %1560 = vmatpush3.bf16.msra.mxu0 %v1660_v1  ;;  %1608 = vmatpush3.bf16.msra.mxu1 %v1660_v1  ;;  %v1676_v17 = vld [vmem:[#allocation5 + $0xa0] sm:$0xff]   ;;  %v1677_v18 = vld [vmem:[#allocation5 + $0x28] sm:$0xff]   ;;  %v1679_v20 = vld [vmem:[#allocation5 + $0x30] sm:$0xff]   ;;  %v1989_v61 = vadd.s32 56, %v1949_v44  ;;  %v400_v0 = vadd.s32 40, %v1949_v44  ;;  %v1999_v1 = vadd.s32 64, %v1949_v44 }
  0x1c   :  { %1561 = vmatprep.subr.bf16.mxu0 %v1661_v2  ;;  %1609 = vmatprep.subr.bf16.mxu1 %v1661_v2  ;;  %v1678_v19 = vld [vmem:[#allocation5 + $0xa8] sm:$0xff]   ;;  %v1680_v21 = vld [vmem:[#allocation5 + $0xb0] sm:$0xff]   ;;  %v1681_v22 = vld [vmem:[#allocation5 + $0x38] sm:$0xff]   ;;  %v2335_v41 = vadd.s32 168, %v1949_v44  ;;  %s1856_s20 = scalar_lea.vmem %s1460_s17, 16  ;;  %s1860_s21 = scalar_lea.vmem %s1460_s17, 32 }
  0x1d   :  { %v1682_v23 = vld [vmem:[#allocation5 + $0xb8] sm:$0xff]   ;;  %v1683_v24 = vld [vmem:[#allocation5 + $0x40] sm:$0xff]   ;;  %v1685_v26 = vld [vmem:[#allocation5 + $0x48] sm:$0xff]   ;;  %p1857_p8 = scmp.ne.s32.totalorder %s1460_s17, %s1856_s20  ;;  %p1862_p10 = scmp.lt.s32.totalorder %s1860_s21, %s1856_s20 }
  0x1e   :  { %v1684_v25 = vld [vmem:[#allocation5 + $0xc0] sm:$0xff]   ;;  %v1686_v27 = vld [vmem:[#allocation5 + $0xc8] sm:$0xff]   ;;  %v1687_v28 = vld [vmem:[#allocation5 + $0x50] sm:$0xff]  }
  0x1f   :  { %1562 = vmatpush3.bf16.msra.mxu0 %v1661_v2  ;;  %1610 = vmatpush3.bf16.msra.mxu1 %v1661_v2  ;;  %v1688_v29 = vld [vmem:[#allocation5 + $0xd0] sm:$0xff]   ;;  %v1689_v30 = vld [vmem:[#allocation5 + $0x58] sm:$0xff]   ;;  %v1691_v32 = vld [vmem:[#allocation5 + $0x60] sm:$0xff]   ;;  %p1863_p11 = por %p1862_p10, %p1861_p9 }
  0x20   :  { %1563 = vmatprep.subr.bf16.mxu0 %v1662_v3  ;;  %1611 = vmatprep.subr.bf16.mxu1 %v1662_v3  ;;  %v1690_v31 = vld [vmem:[#allocation5 + $0xd8] sm:$0xff]   ;;  %v1692_v33 = vld [vmem:[#allocation5 + $0xe0] sm:$0xff]   ;;  %v1693_v34 = vld [vmem:[#allocation5 + $0x68] sm:$0xff]  }
  0x21   :  { %v1694_v35 = vld [vmem:[#allocation5 + $0xe8] sm:$0xff]   ;;  %v1695_v36 = vld [vmem:[#allocation5 + $0x70] sm:$0xff]   ;;  %v1697_v38 = vld [vmem:[#allocation5 + $0x78] sm:$0xff]   ;;  %p1864_p12 = pnand %p1863_p11, %p1857_p8 }
  0x22   :  { %v1696_v37 = vld [vmem:[#allocation5 + $0xf0] sm:$0xff]   ;;  %v1698_v39 = vld [vmem:[#allocation5 + $0xf8] sm:$0xff]  }
  0x23   :  { %1564 = vmatpush3.bf16.msra.mxu0 %v1662_v3  ;;  %1612 = vmatpush3.bf16.msra.mxu1 %v1662_v3  ;;  %v55_v43 = vld [vmem:[%s2954_s2] sm:$0x1] }
  0x24   :  { %1565 = vmatprep.subr.bf16.mxu0 %v1663_v6  ;;  %1613 = vmatprep.subr.bf16.mxu1 %v1663_v6  ;;  %v1508_v45 = vadd.s32 4294967040, %v55_v43  ;;  %v1958_v48 = vrot.slane %v55_v43, %v1952_v46 }
  0x26   :  { %v1955_v47 = vrot.slane %v1508_v45, %v1952_v46  ;;  %vm499_vm1 = vcmp.eq.s32.totalorder %v1949_v44, %v1958_v48  ;;  %vm500_vm3 = vcmp.eq.s32.totalorder %v396_v49, %v1958_v48  ;;  %vm501_vm5 = vcmp.eq.s32.totalorder %v397_v50, %v1958_v48 }
  0x27   :  { %1566 = vmatpush3.bf16.msra.mxu0 %v1663_v6  ;;  %1614 = vmatpush3.bf16.msra.mxu1 %v1663_v6  ;;  %vm502_vm6 = vcmp.eq.s32.totalorder %v398_v51, %v1958_v48  ;;  %vm505_vm8 = vcmp.eq.s32.totalorder %v1972_v54, %v1958_v48  ;;  %vm503_vm10 = vcmp.eq.s32.totalorder %v399_v57, %v1958_v48 }
  0x28   :  { %1567 = vmatprep.subr.bf16.mxu0 %v1664_v7  ;;  %1615 = vmatprep.subr.bf16.mxu1 %v1664_v7  ;;  %vm1151_vm0 = vcmp.eq.s32.totalorder %v1949_v44, %v1955_v47  ;;  %vm1153_vm2 = vcmp.eq.s32.totalorder %v397_v50, %v1955_v47  ;;  %vm1152_vm4 = vcmp.eq.s32.totalorder %v396_v49, %v1955_v47  ;;  %v2116_v50 = vadd.s32 112, %v1949_v44 }
  0x29   :  { %vm1154_vm7 = vcmp.eq.s32.totalorder %v398_v51, %v1955_v47  ;;  %vm1157_vm9 = vcmp.eq.s32.totalorder %v1972_v54, %v1955_v47  ;;  %vm1155_vm11 = vcmp.eq.s32.totalorder %v399_v57, %v1955_v47  ;;  %vm506_vm12 = vcmp.eq.s32.totalorder %v1989_v61, %v1958_v48 }
  0x2a   :  { %vm1158_vm13 = vcmp.eq.s32.totalorder %v1989_v61, %v1955_v47  ;;  %vm504_vm14 = vcmp.eq.s32.totalorder %v400_v0, %v1958_v48  ;;  %vm1156_vm15 = vcmp.eq.s32.totalorder %v400_v0, %v1955_v47  ;;  %v2129_v54 = vadd.s32 120, %v1949_v44 }
  0x2b   :  { %1568 = vmatpush3.bf16.msra.mxu0 %v1664_v7  ;;  %1616 = vmatpush3.bf16.msra.mxu1 %v1664_v7 }
  0x2c   :  { %1569 = vmatprep.subr.bf16.mxu0 %v1665_v8  ;;  %1617 = vmatprep.subr.bf16.mxu1 %v1665_v8 }
  0x2f   :  { %1570 = vmatpush3.bf16.msra.mxu0 %v1665_v8  ;;  %1618 = vmatpush3.bf16.msra.mxu1 %v1665_v8 }
  0x30   :  { %1571 = vmatprep.subr.bf16.mxu0 %v1666_v9  ;;  %1619 = vmatprep.subr.bf16.mxu1 %v1666_v9 }
  0x33   :  { %1572 = vmatpush3.bf16.msra.mxu0 %v1666_v9  ;;  %1620 = vmatpush3.bf16.msra.mxu1 %v1666_v9 }
  0x36   :  { %1574 = vmatmul.mubr.bf16.vlgmr.msra.gmra.mrb[0].mxu0 %v1669_v10  ;;  %1622 = vmatmul.mubr.bf16.vlgmr.msra.gmra.mrb[0].mxu1 %v1670_v11 }
  0x37   :  { %1577 = vmatprep.mubr.bf16.mxu0 %v1671_v12  ;;  %1625 = vmatprep.mubr.bf16.mxu1 %v1672_v13 }
  0x3e   :  { %1578 = vmatmul.mubr.bf16.gmra.mrb[4].mxu0 %v1673_v14  ;;  %1626 = vmatmul.mubr.bf16.gmra.mrb[4].mxu1 %v1674_v15  ;;  %v2037_v14 = vadd.s32 80, %v1949_v44  ;;  %v2042_v15 = vadd.s32 88, %v1949_v44 }
  0x3f   :  { %1581 = vmatprep.mubr.bf16.mxu0 %v1675_v16  ;;  %1629 = vmatprep.mubr.bf16.mxu1 %v1676_v17 }
  0x46   :  { %1582 = vmatmul.mubr.bf16.gmra.mrb[8].mxu0 %v1677_v18  ;;  %1630 = vmatmul.mubr.bf16.gmra.mrb[8].mxu1 %v1678_v19 }
  0x47   :  { %1585 = vmatprep.mubr.bf16.mxu0 %v1679_v20  ;;  %1633 = vmatprep.mubr.bf16.mxu1 %v1680_v21  ;;  %v2056_v21 = vadd.s32 72, %v1949_v44 }
  0x4e   :  { %1586 = vmatmul.mubr.bf16.gmra.mrb[12].mxu0 %v1681_v22  ;;  %1634 = vmatmul.mubr.bf16.gmra.mrb[12].mxu1 %v1682_v23 }
  0x4f   :  { %1589 = vmatprep.mubr.bf16.mxu0 %v1683_v24  ;;  %1637 = vmatprep.mubr.bf16.mxu1 %v1684_v25 }
  0x56   :  { %1590 = vmatmul.mubr.bf16.gmra.mrb[16].mxu0 %v1685_v26  ;;  %1638 = vmatmul.mubr.bf16.gmra.mrb[16].mxu1 %v1686_v27 }
  0x57   :  { %1593 = vmatprep.mubr.bf16.mxu0 %v1687_v28  ;;  %1641 = vmatprep.mubr.bf16.mxu1 %v1688_v29 }
  0x5e   :  { %1594 = vmatmul.mubr.bf16.gmra.mrb[20].mxu0 %v1689_v30  ;;  %1642 = vmatmul.mubr.bf16.gmra.mrb[20].mxu1 %v1690_v31 }
  0x5f   :  { %1597 = vmatprep.mubr.bf16.mxu0 %v1691_v32  ;;  %1645 = vmatprep.mubr.bf16.mxu1 %v1692_v33 }
  0x66   :  { %1598 = vmatmul.mubr.bf16.gmra.mrb[24].mxu0 %v1693_v34  ;;  %1646 = vmatmul.mubr.bf16.gmra.mrb[24].mxu1 %v1694_v35 }
  0x67   :  { %1601 = vmatprep.mubr.bf16.mxu0 %v1695_v36  ;;  %1649 = vmatprep.mubr.bf16.mxu1 %v1696_v37  ;;  %v2090_v36 = vadd.s32 96, %v1949_v44 }
  0x6e   :  { %1602 = vmatmul.mubr.bf16.gmra.mrb[28].mxu0 %v1697_v38  ;;  %1650 = vmatmul.mubr.bf16.gmra.mrb[28].mxu1 %v1698_v39 }
 0x109   :  { %v1965_v52 = vpop.f32.mrb[0].mxu0  ;;  %v1967_v53 = vpop.f32.mrb[0].mxu1 }
 0x10a   :  { %3019 = vst [vmem:[#allocation11_spill] sm:$0xff] %v1967_v53  ;;  %v1975_v55 = vpop.f32.mrb[1].mxu0  ;;  %v1977_v56 = vpop.f32.mrb[1].mxu1  ;;  %v1186_v2 = vsel %vm1153_vm2, %v1967_v53, 0.0  ;;  %v534_v8 = vsel %vm501_vm5, %v1965_v52, 0.0  ;;  %vm1159_vm2 = vcmp.eq.s32.totalorder %v1999_v1, %v1955_v47  ;;  %vm1162_vm5 = vcmp.eq.s32.totalorder %v2042_v15, %v1955_v47 }
 0x10b   :  { %v1184_v58 = vsel %vm1151_vm0, %v1977_v56, 0.0  ;;  %v1984_v59 = vpop.f32.mrb[2].mxu0  ;;  %v1986_v60 = vpop.f32.mrb[2].mxu1  ;;  %v532_v3 = vsel %vm499_vm1, %v1975_v55, 0.0  ;;  %vm507_vm0 = vcmp.eq.s32.totalorder %v1999_v1, %v1958_v48  ;;  %vm1161_vm1 = vcmp.eq.s32.totalorder %v2037_v14, %v1955_v47 }
 0x10c   :  { %3020 = vst [vmem:[#allocation12_spill] sm:$0xff] %v1986_v60  ;;  %v1993_v62 = vpop.f32.mrb[3].mxu0  ;;  %v1995_v63 = vpop.f32.mrb[3].mxu1  ;;  %v1187_v11 = vsel %vm1154_vm7, %v1986_v60, 0.0  ;;  %v535_v16 = vsel %vm502_vm6, %v1984_v59, 0.0  ;;  %vm508_vm6 = vcmp.eq.s32.totalorder %v2056_v21, %v1958_v48  ;;  %vm1160_vm7 = vcmp.eq.s32.totalorder %v2056_v21, %v1955_v47 }
 0x10d   :  { %3021 = vst [vmem:[#allocation13_spill] sm:$0xff] %v1995_v63  ;;  %v533_v4 = vsel %vm500_vm3, %v1993_v62, 0.0  ;;  %v1185_v5 = vsel %vm1152_vm4, %v1995_v63, 0.0  ;;  %vm509_vm3 = vcmp.eq.s32.totalorder %v2037_v14, %v1958_v48  ;;  %vm510_vm4 = vcmp.eq.s32.totalorder %v2042_v15, %v1958_v48 }
 0x10e   :  { %v564_v6 = vadd.f32 %v533_v4, %v532_v3  ;;  %v1216_v7 = vadd.f32 %v1185_v5, %v1184_v58  ;;  %v2229_v14 = vadd.s32 152, %v1949_v44 }
 0x110   :  { %v565_v9 = vadd.f32 %v564_v6, %v534_v8  ;;  %v1217_v10 = vadd.f32 %v1216_v7, %v1186_v2  ;;  %v2143_v7 = vadd.s32 104, %v1949_v44 }
 0x111   :  { %v2032_v12 = vpop.f32.mrb[4].mxu0  ;;  %v2034_v13 = vpop.f32.mrb[4].mxu1 }
 0x112   :  { %3022 = vst [vmem:[#allocation14_spill] sm:$0xff] %v2034_v13  ;;  %v606_v17 = vmax.f32 %v1965_v52, %v2032_v12  ;;  %v1258_v18 = vmax.f32 %v1967_v53, %v2034_v13  ;;  %v2051_v19 = vpop.f32.mrb[5].mxu0  ;;  %v2053_v20 = vpop.f32.mrb[5].mxu1  ;;  %v566_v23 = vadd.f32 %v565_v9, %v535_v16  ;;  %v1218_v28 = vadd.f32 %v1217_v10, %v1187_v11 }
 0x113   :  { %3023 = vst [vmem:[#allocation15_spill] sm:$0xff] %v2053_v20  ;;  %v536_v22 = vsel %vm503_vm10, %v2051_v19, 0.0  ;;  %v604_v24 = vmax.f32 %v1975_v55, %v2051_v19  ;;  %v1188_v25 = vsel %vm1155_vm11, %v2053_v20, 0.0  ;;  %v2066_v26 = vpop.f32.mrb[6].mxu0  ;;  %v2068_v27 = vpop.f32.mrb[6].mxu1  ;;  %v1256_v29 = vmax.f32 %v1977_v56, %v2053_v20 }
 0x114   :  { %3024 = vst [vmem:[#allocation16_spill] sm:$0xff] %v2068_v27  ;;  %v607_v30 = vmax.f32 %v1984_v59, %v2066_v26  ;;  %v2074_v31 = vpop.f32.mrb[7].mxu0  ;;  %v2076_v32 = vpop.f32.mrb[7].mxu1  ;;  %v567_v33 = vadd.f32 %v566_v23, %v536_v22  ;;  %v1259_v34 = vmax.f32 %v1986_v60, %v2068_v27  ;;  %v1219_v37 = vadd.f32 %v1218_v28, %v1188_v25 }
 0x115   :  { %3025 = vst [vmem:[#allocation17_spill] sm:$0xff] %v2076_v32  ;;  %v537_v35 = vsel %vm504_vm14, %v2074_v31, 0.0  ;;  %v605_v38 = vmax.f32 %v1993_v62, %v2074_v31  ;;  %v1189_v39 = vsel %vm1156_vm15, %v2076_v32, 0.0  ;;  %v1257_v40 = vmax.f32 %v1995_v63, %v2076_v32 }
 0x116   :  { %v1190_v42 = vsel %vm1157_vm9, %v2034_v13, 0.0  ;;  %v568_v43 = vadd.f32 %v567_v33, %v537_v35  ;;  %v538_v45 = vsel %vm505_vm8, %v2032_v12, 0.0  ;;  %v1220_v49 = vadd.f32 %v1219_v37, %v1189_v39 }
 0x117   :  { %v1191_v51 = vsel %vm1158_vm13, %v2068_v27, 0.0  ;;  %vm511_vm8 = vcmp.eq.s32.totalorder %v2090_v36, %v1958_v48  ;;  %v539_v2 = vsel %vm506_vm12, %v2066_v26, 0.0  ;;  %vm1165_vm9 = vcmp.eq.s32.totalorder %v2116_v50, %v1955_v47 }
 0x118   :  { %v569_v57 = vadd.f32 %v568_v43, %v538_v45  ;;  %v1221_v3 = vadd.f32 %v1220_v49, %v1190_v42  ;;  %vm1163_vm10 = vcmp.eq.s32.totalorder %v2090_v36, %v1955_v47  ;;  %vm513_vm11 = vcmp.eq.s32.totalorder %v2116_v50, %v1958_v48 }
 0x119   :  { %v2122_v58 = vpop.f32.mrb[8].mxu0  ;;  %v2124_v0 = vpop.f32.mrb[8].mxu1  ;;  %vm1166_vm12 = vcmp.eq.s32.totalorder %v2129_v54, %v1955_v47  ;;  %vm514_vm13 = vcmp.eq.s32.totalorder %v2129_v54, %v1958_v48  ;;  %vm512_vm14 = vcmp.eq.s32.totalorder %v2143_v7, %v1958_v48  ;;  %vm1164_vm15 = vcmp.eq.s32.totalorder %v2143_v7, %v1955_v47 }
 0x11a   :  { %3026 = vst [vmem:[#allocation18_spill] sm:$0xff] %v2124_v0  ;;  %v2136_v4 = vmax.f32 %v606_v17, %v2122_v58  ;;  %v2138_v5 = vpop.f32.mrb[9].mxu0  ;;  %v2140_v6 = vpop.f32.mrb[9].mxu1  ;;  %v2146_v8 = vmax.f32 %v1258_v18, %v2124_v0  ;;  %v570_v9 = vadd.f32 %v569_v57, %v539_v2  ;;  %v1222_v18 = vadd.f32 %v1221_v3, %v1191_v51 }
 0x11b   :  { %3027 = vst [vmem:[#allocation19_spill] sm:$0xff] %v2140_v6  ;;  %v540_v61 = vsel %vm507_vm0, %v2138_v5, 0.0  ;;  %v2153_v10 = vmax.f32 %v604_v24, %v2138_v5  ;;  %v2155_v11 = vpop.f32.mrb[10].mxu0  ;;  %v2157_v16 = vpop.f32.mrb[10].mxu1  ;;  %v1192_v17 = vsel %vm1159_vm2, %v2140_v6, 0.0  ;;  %v2164_v22 = vmax.f32 %v1256_v29, %v2140_v6 }
 0x11c   :  { %3028 = vst [vmem:[#allocation20_spill] sm:$0xff] %v2157_v16  ;;  %v2166_v23 = vpop.f32.mrb[11].mxu0  ;;  %v2168_v25 = vpop.f32.mrb[11].mxu1  ;;  %v571_v24 = vadd.f32 %v570_v9, %v540_v61  ;;  %v2175_v28 = vmax.f32 %v607_v30, %v2155_v11  ;;  %v2178_v1 = vmax.f32 %v1259_v34, %v2157_v16  ;;  %v2183_v29 = vadd.s32 128, %v1949_v44 }
 0x11d   :  { %3029 = vst [vmem:[#allocation21_spill] sm:$0xff] %v2168_v25  ;;  %v1223_v33 = vadd.f32 %v1222_v18, %v1192_v17  ;;  %v541_v35 = vsel %vm508_vm6, %v2166_v23, 0.0  ;;  %v2190_v37 = vmax.f32 %v605_v38, %v2166_v23  ;;  %v1193_v30 = vsel %vm1160_vm7, %v2168_v25, 0.0 }
 0x11e   :  { %v1194_v34 = vsel %vm1161_vm1, %v2124_v0, 0.0  ;;  %v572_v39 = vadd.f32 %v571_v24, %v541_v35  ;;  %v2203_v42 = vmax.f32 %v1257_v40, %v2168_v25  ;;  %v542_v21 = vsel %vm509_vm3, %v2122_v58, 0.0 }
 0x11f   :  { %v1224_v38 = vadd.f32 %v1223_v33, %v1193_v30  ;;  %v2216_v43 = vadd.s32 144, %v1949_v44  ;;  %v1195_v40 = vsel %vm1162_vm5, %v2157_v16, 0.0  ;;  %vm515_vm0 = vcmp.eq.s32.totalorder %v2183_v29, %v1958_v48 }
 0x120   :  { %v573_v45 = vadd.f32 %v572_v39, %v542_v21  ;;  %v543_v57 = vsel %vm510_vm4, %v2155_v11, 0.0  ;;  %v2242_v17 = vadd.s32 136, %v1949_v44  ;;  %vm1167_vm2 = vcmp.eq.s32.totalorder %v2183_v29, %v1955_v47 }
 0x121   :  { %v2222_v49 = vpop.f32.mrb[12].mxu0  ;;  %v2224_v51 = vpop.f32.mrb[12].mxu1  ;;  %v1225_v2 = vadd.f32 %v1224_v38, %v1194_v34  ;;  %vm1169_vm1 = vcmp.eq.s32.totalorder %v2216_v43, %v1955_v47  ;;  %vm517_vm3 = vcmp.eq.s32.totalorder %v2216_v43, %v1958_v48  ;;  %vm1170_vm4 = vcmp.eq.s32.totalorder %v2229_v14, %v1955_v47 }
 0x122   :  { %3030 = vst [vmem:[#allocation22_spill] sm:$0xff] %v2224_v51  ;;  %v614_v3 = vmax.f32 %v2136_v4, %v2222_v49  ;;  %v2237_v61 = vpop.f32.mrb[13].mxu0  ;;  %v2239_v9 = vpop.f32.mrb[13].mxu1  ;;  %v1266_v18 = vmax.f32 %v2146_v8, %v2224_v51  ;;  %v574_v24 = vadd.f32 %v573_v45, %v543_v57  ;;  %vm518_vm5 = vcmp.eq.s32.totalorder %v2229_v14, %v1958_v48 }
 0x123   :  { %3031 = vst [vmem:[#allocation23_spill] sm:$0xff] %v2239_v9  ;;  %v544_v15 = vsel %vm511_vm8, %v2237_v61, 0.0  ;;  %v612_v33 = vmax.f32 %v2153_v10, %v2237_v61  ;;  %v2252_v4 = vpop.f32.mrb[14].mxu0  ;;  %v2254_v35 = vpop.f32.mrb[14].mxu1  ;;  %v1196_v30 = vsel %vm1163_vm10, %v2239_v9, 0.0  ;;  %v1226_v34 = vadd.f32 %v1225_v2, %v1195_v40 }
 0x124   :  { %3032 = vst [vmem:[#allocation24_spill] sm:$0xff] %v2254_v35  ;;  %v1264_v8 = vmax.f32 %v2164_v22, %v2239_v9  ;;  %v2262_v39 = vpop.f32.mrb[15].mxu0  ;;  %v2264_v21 = vpop.f32.mrb[15].mxu1  ;;  %v575_v10 = vadd.f32 %v574_v24, %v544_v15  ;;  %v615_v38 = vmax.f32 %v2175_v28, %v2252_v4  ;;  %v1267_v36 = vmax.f32 %v2178_v1, %v2254_v35 }
 0x125   :  { %3033 = vst [vmem:[#allocation25_spill] sm:$0xff] %v2264_v21  ;;  %v2277_v22 = vadd.s32 160, %v1949_v44  ;;  %v1227_v40 = vadd.f32 %v1226_v34, %v1196_v30  ;;  %v545_v45 = vsel %vm512_vm14, %v2262_v39, 0.0  ;;  %v613_v57 = vmax.f32 %v2190_v37, %v2262_v39 }
 0x126   :  { %v1197_v28 = vsel %vm1164_vm15, %v2264_v21, 0.0  ;;  %v1198_v1 = vsel %vm1165_vm9, %v2224_v51, 0.0  ;;  %v576_v2 = vadd.f32 %v575_v10, %v545_v45  ;;  %v1265_v15 = vmax.f32 %v2203_v42, %v2264_v21 }
 0x127   :  { %vm516_vm6 = vcmp.eq.s32.totalorder %v2242_v17, %v1958_v48  ;;  %v546_v7 = vsel %vm513_vm11, %v2222_v49, 0.0  ;;  %v1228_v37 = vadd.f32 %v1227_v40, %v1197_v28  ;;  %vm1168_vm7 = vcmp.eq.s32.totalorder %v2242_v17, %v1955_v47 }
 0x128   :  { %v2308_v24 = vadd.s32 176, %v1949_v44  ;;  %v1199_v42 = vsel %vm1166_vm12, %v2254_v35, 0.0  ;;  %v577_v30 = vadd.f32 %v576_v2, %v546_v7  ;;  %vm519_vm8 = vcmp.eq.s32.totalorder %v2277_v22, %v1958_v48 }
 0x129   :  { %v2314_v34 = vpop.f32.mrb[16].mxu0  ;;  %v2316_v10 = vpop.f32.mrb[16].mxu1  ;;  %v2321_v50 = vadd.s32 184, %v1949_v44  ;;  %v547_v40 = vsel %vm514_vm13, %v2252_v4, 0.0  ;;  %v1229_v45 = vadd.f32 %v1228_v37, %v1198_v1  ;;  %vm1171_vm10 = vcmp.eq.s32.totalorder %v2277_v22, %v1955_v47 }
 0x12a   :  { %3034 = vst [vmem:[#allocation26_spill] sm:$0xff] %v2316_v10  ;;  %v2328_v28 = vmax.f32 %v614_v3, %v2314_v34  ;;  %v2330_v2 = vpop.f32.mrb[17].mxu0  ;;  %v2332_v7 = vpop.f32.mrb[17].mxu1  ;;  %v2338_v35 = vmax.f32 %v1266_v18, %v2316_v10  ;;  %v578_v51 = vadd.f32 %v577_v30, %v547_v40  ;;  %vm1173_vm9 = vcmp.eq.s32.totalorder %v2308_v24, %v1955_v47 }
 0x12b   :  { %3035 = vst [vmem:[#allocation27_spill] sm:$0xff] %v2332_v7  ;;  %v548_v54 = vsel %vm515_vm0, %v2330_v2, 0.0  ;;  %v2345_v1 = vmax.f32 %v612_v33, %v2330_v2  ;;  %v2347_v3 = vpop.f32.mrb[18].mxu0  ;;  %v2349_v37 = vpop.f32.mrb[18].mxu1  ;;  %v1200_v21 = vsel %vm1167_vm2, %v2332_v7, 0.0  ;;  %v1230_v18 = vadd.f32 %v1229_v45, %v1199_v42 }
 0x12c   :  { %3036 = vst [vmem:[#allocation28_spill] sm:$0xff] %v2349_v37  ;;  %v2356_v9 = vmax.f32 %v1264_v8, %v2332_v7  ;;  %v2358_v16 = vpop.f32.mrb[19].mxu0  ;;  %v2360_v0 = vpop.f32.mrb[19].mxu1  ;;  %v579_v33 = vadd.f32 %v578_v51, %v548_v54  ;;  %v2367_v30 = vmax.f32 %v615_v38, %v2347_v3  ;;  %v2370_v29 = vmax.f32 %v1267_v36, %v2349_v37 }
 0x12d   :  { %3037 = vst [vmem:[#allocation29_spill] sm:$0xff] %v2360_v0  ;;  %vm521_vm11 = vcmp.eq.s32.totalorder %v2308_v24, %v1958_v48  ;;  %v2375_v8 = vadd.s32 192, %v1949_v44  ;;  %v1231_v42 = vadd.f32 %v1230_v18, %v1200_v21  ;;  %v549_v40 = vsel %vm516_vm6, %v2358_v16, 0.0 }
 0x12e   :  { %v2382_v51 = vmax.f32 %v613_v57, %v2358_v16  ;;  %v1201_v38 = vsel %vm1168_vm7, %v2360_v0, 0.0  ;;  %vm1174_vm12 = vcmp.eq.s32.totalorder %v2321_v50, %v1955_v47  ;;  %v1202_v21 = vsel %vm1169_vm1, %v2316_v10, 0.0 }
 0x12f   :  { %v580_v36 = vadd.f32 %v579_v33, %v549_v40  ;;  %v2395_v45 = vmax.f32 %v1265_v15, %v2360_v0  ;;  %vm522_vm13 = vcmp.eq.s32.totalorder %v2321_v50, %v1958_v48  ;;  %vm520_vm14 = vcmp.eq.s32.totalorder %v2335_v41, %v1958_v48 }
 0x130   :  { %v550_v17 = vsel %vm517_vm3, %v2314_v34, 0.0  ;;  %v1232_v57 = vadd.f32 %v1231_v42, %v1201_v38  ;;  %vm1172_vm15 = vcmp.eq.s32.totalorder %v2335_v41, %v1955_v47  ;;  %v2408_v54 = vadd.s32 208, %v1949_v44 }
 0x131   :  { %v1203_v15 = vsel %vm1170_vm4, %v2349_v37, 0.0  ;;  %v581_v18 = vadd.f32 %v580_v36, %v550_v17  ;;  %v2414_v33 = vpop.f32.mrb[20].mxu0  ;;  %v2416_v40 = vpop.f32.mrb[20].mxu1  ;;  %vm523_vm0 = vcmp.eq.s32.totalorder %v2375_v8, %v1958_v48  ;;  %v2421_v43 = vadd.s32 216, %v1949_v44 }
 0x132   :  { %3038 = vst [vmem:[#allocation30_spill] sm:$0xff] %v2416_v40  ;;  %v551_v42 = vsel %vm518_vm5, %v2347_v3, 0.0  ;;  %v1233_v38 = vadd.f32 %v1232_v57, %v1202_v21  ;;  %v622_v37 = vmax.f32 %v2328_v28, %v2414_v33  ;;  %v2429_v36 = vpop.f32.mrb[21].mxu0  ;;  %v2431_v17 = vpop.f32.mrb[21].mxu1  ;;  %vm1175_vm1 = vcmp.eq.s32.totalorder %v2375_v8, %v1955_v47 }
 0x133   :  { %3039 = vst [vmem:[#allocation31_spill] sm:$0xff] %v2431_v17  ;;  %v1274_v10 = vmax.f32 %v2338_v35, %v2416_v40  ;;  %v552_v14 = vsel %vm519_vm8, %v2429_v36, 0.0  ;;  %v582_v0 = vadd.f32 %v581_v18, %v551_v42  ;;  %v620_v21 = vmax.f32 %v2345_v1, %v2429_v36  ;;  %v2443_v28 = vpop.f32.mrb[22].mxu0  ;;  %v2445_v57 = vpop.f32.mrb[22].mxu1 }
 0x134   :  { %3040 = vst [vmem:[#allocation32_spill] sm:$0xff] %v2445_v57  ;;  %v1204_v7 = vsel %vm1171_vm10, %v2431_v17, 0.0  ;;  %v1234_v25 = vadd.f32 %v1233_v38, %v1203_v15  ;;  %v1272_v35 = vmax.f32 %v2356_v9, %v2431_v17  ;;  %v2453_v6 = vpop.f32.mrb[23].mxu0  ;;  %v2455_v27 = vpop.f32.mrb[23].mxu1  ;;  %vm1177_vm2 = vcmp.eq.s32.totalorder %v2408_v54, %v1955_v47 }
 0x135   :  { %3041 = vst [vmem:[#allocation33_spill] sm:$0xff] %v2455_v27  ;;  %v420_v1 = vadd.s32 200, %v1949_v44  ;;  %v583_v18 = vadd.f32 %v582_v0, %v552_v14  ;;  %v623_v42 = vmax.f32 %v2367_v30, %v2443_v28  ;;  %v1275_v22 = vmax.f32 %v2370_v29, %v2445_v57 }
 0x136   :  { %vm525_vm3 = vcmp.eq.s32.totalorder %v2408_v54, %v1958_v48  ;;  %v2467_v9 = vadd.s32 240, %v1949_v44  ;;  %v1235_v15 = vadd.f32 %v1234_v25, %v1204_v7  ;;  %v553_v38 = vsel %vm520_vm14, %v2453_v6, 0.0 }
 0x137   :  { %v621_v0 = vmax.f32 %v2382_v51, %v2453_v6  ;;  %v1205_v30 = vsel %vm1172_vm15, %v2455_v27, 0.0  ;;  %v1206_v29 = vsel %vm1173_vm9, %v2416_v40, 0.0  ;;  %v584_v14 = vadd.f32 %v583_v18, %v553_v38 }
 0x138   :  { %v1273_v25 = vmax.f32 %v2395_v45, %v2455_v27  ;;  %vm526_vm4 = vcmp.eq.s32.totalorder %v2421_v43, %v1958_v48  ;;  %v554_v7 = vsel %vm521_vm11, %v2414_v33, 0.0  ;;  %v1236_v51 = vadd.f32 %v1235_v15, %v1205_v30 }
 0x139   :  { %vm1178_vm5 = vcmp.eq.s32.totalorder %v2421_v43, %v1955_v47  ;;  %vm524_vm6 = vcmp.eq.s32.totalorder %v420_v1, %v1958_v48  ;;  %v1207_v41 = vsel %vm1174_vm12, %v2445_v57, 0.0  ;;  %v585_v45 = vadd.f32 %v584_v14, %v554_v7  ;;  %v2498_v18 = vpop.f32.mrb[24].mxu0  ;;  %v2500_v38 = vpop.f32.mrb[24].mxu1 }
 0x13a   :  { %3042 = vst [vmem:[#allocation34_spill] sm:$0xff] %v2500_v38  ;;  %vm1176_vm7 = vcmp.eq.s32.totalorder %v420_v1, %v1955_v47  ;;  %v423_v24 = vadd.s32 224, %v1949_v44  ;;  %v555_v15 = vsel %vm522_vm13, %v2443_v28, 0.0  ;;  %v1237_v30 = vadd.f32 %v1236_v51, %v1206_v29  ;;  %v2511_v27 = vpop.f32.mrb[25].mxu0  ;;  %v2513_v14 = vpop.f32.mrb[25].mxu1 }
 0x13b   :  { %v2509_v40 = vmax.f32 %v622_v37, %v2498_v18  ;;  %3043 = vst [vmem:[#allocation35_spill] sm:$0xff] %v2513_v14  ;;  %vm1111_vm8 = vcmp.lt.s32.totalorder %v2467_v9, 244  ;;  %v1278_v7 = vmax.f32 %v1274_v10, %v2500_v38  ;;  %v556_v57 = vsel %vm523_vm0, %v2511_v27, 0.0  ;;  %v2524_v29 = vpop.f32.mrb[26].mxu0  ;;  %v2526_v37 = vpop.f32.mrb[26].mxu1 }
 0x13c   :  { %v586_v17 = vadd.f32 %v585_v45, %v555_v15  ;;  %v2522_v50 = vmax.f32 %v620_v21, %v2511_v27  ;;  %3044 = vst [vmem:[#allocation36_spill] sm:$0xff] %v2526_v37  ;;  %v1208_v51 = vsel %vm1175_vm1, %v2513_v14, 0.0  ;;  %v1238_v13 = vadd.f32 %v1237_v30, %v1207_v41  ;;  %v2535_v32 = vpop.f32.mrb[27].mxu0  ;;  %v2537_v20 = vpop.f32.mrb[27].mxu1 }
 0x13d   :  { %v2533_v10 = vmax.f32 %v1272_v35, %v2513_v14  ;;  %3045 = vst [vmem:[#allocation37_spill] sm:$0xff] %v2537_v20  ;;  %vm1181_vm9 = vcmp.eq.s32.totalorder %v2467_v9, %v1955_v47  ;;  %v426_v21 = vadd.s32 248, %v1949_v44  ;;  %v627_v15 = vmax.f32 %v623_v42, %v2524_v29 }
 0x13e   :  { %v587_v45 = vadd.f32 %v586_v17, %v556_v57  ;;  %v1279_v60 = vmax.f32 %v1275_v22, %v2526_v37  ;;  %vm529_vm10 = vcmp.eq.s32.totalorder %v2467_v9, %v1958_v48  ;;  %v424_v8 = vadd.s32 232, %v1949_v44 }
 0x13f   :  { %v1239_v35 = vadd.f32 %v1238_v13, %v1208_v51  ;;  %v557_v41 = vsel %vm524_vm6, %v2535_v32, 0.0  ;;  %v625_v30 = vmax.f32 %v621_v0, %v2535_v32  ;;  %v1209_v17 = vsel %vm1176_vm7, %v2537_v20, 0.0 }
 0x140   :  { %v1210_v57 = vsel %vm1177_vm2, %v2500_v38, 0.0  ;;  %v588_v42 = vadd.f32 %v587_v45, %v557_v41  ;;  %v1277_v22 = vmax.f32 %v1273_v25, %v2537_v20  ;;  %vm527_vm11 = vcmp.eq.s32.totalorder %v423_v24, %v1958_v48 }
 0x141   :  { %v558_v44 = vsel %vm525_vm3, %v2498_v18, 0.0  ;;  %v1240_v13 = vadd.f32 %v1239_v35, %v1209_v17  ;;  %vm1179_vm12 = vcmp.eq.s32.totalorder %v423_v24, %v1955_v47  ;;  %vm530_vm13 = vcmp.eq.s32.totalorder %v426_v21, %v1958_v48  ;;  %v2570_v51 = vpop.f32.mrb[28].mxu0  ;;  %v1651_v25 = vpop.f32.mrb[28].mxu1 }
 0x142   :  { %v1211_v1 = vsel %vm1178_vm5, %v2526_v37, 0.0  ;;  %v589_v0 = vadd.f32 %v588_v42, %v558_v44  ;;  %vm528_vm14 = vcmp.eq.s32.totalorder %v424_v8, %v1958_v48  ;;  %vm1180_vm15 = vcmp.eq.s32.totalorder %v424_v8, %v1955_v47  ;;  %v2584_v17 = vpop.f32.mrb[29].mxu0  ;;  %v2586_v42 = vpop.f32.mrb[29].mxu1 }
 0x143   :  { %v559_v54 = vsel %vm526_vm4, %v2524_v29, 0.0  ;;  %v1241_v45 = vadd.f32 %v1240_v13, %v1210_v57  ;;  %v630_v35 = vmax.f32 %v2509_v40, %v2570_v51  ;;  %v2582_v41 = vsel %vm1111_vm8, %v1651_v25, -1e+30  ;;  %3047 = vst [vmem:[#allocation39_spill] sm:$0xff] %v2586_v42  ;;  %v2592_v57 = vpop.f32.mrb[30].mxu0  ;;  %v1652_v13 = vpop.f32.mrb[30].mxu1 }
 0x144   :  { %3046 = vst [vmem:[#allocation38_spill] sm:$0xff] %v2582_v41  ;;  %v1283_v44 = vmax.f32 %v1279_v60, -1e+30  ;;  %v1282_v37 = vmax.f32 %v1278_v7, %v2582_v41  ;;  %v560_v43 = vsel %vm527_vm11, %v2584_v17, 0.0  ;;  %v590_v38 = vadd.f32 %v589_v0, %v559_v54  ;;  %v2601_v7 = vpop.f32.mrb[31].mxu0  ;;  %v2603_v14 = vpop.f32.mrb[31].mxu1 }
 0x145   :  { %v628_v40 = vmax.f32 %v2522_v50, %v2584_v17  ;;  %v1212_v25 = vsel %vm1179_vm12, %v2586_v42, 0.0  ;;  %v1242_v20 = vadd.f32 %v1241_v45, %v1211_v1  ;;  %v1280_v60 = vmax.f32 %v2533_v10, %v2586_v42  ;;  %3048 = vst [vmem:[#allocation40_spill] sm:$0xff] %v2603_v14 }
 0x146   :  { %v1285_v53 = vmax.f32 %v1282_v37, %v1283_v44  ;;  %v591_v0 = vadd.f32 %v590_v38, %v560_v43  ;;  %v631_v54 = vmax.f32 %v627_v15, %v2592_v57  ;;  %vm1182_vm0 = vcmp.eq.s32.totalorder %v426_v21, %v1955_v47  ;;  %v2627_v21 = vld [vmem:[#allocation2] sm:$0x1] }
 0x147   :  { %v1243_v13 = vadd.f32 %v1242_v20, %v1212_v25  ;;  %v561_v24 = vsel %vm528_vm14, %v2601_v7, 0.0  ;;  %v629_v50 = vmax.f32 %v625_v30, %v2601_v7  ;;  %v1213_v10 = vsel %vm1180_vm15, %v2603_v14, 0.0 }
 0x148   :  { %v1214_v38 = vsel %vm1181_vm9, %v2582_v41, 0.0  ;;  %v633_v37 = vmax.f32 %v630_v35, %v631_v54  ;;  %v592_v15 = vadd.f32 %v591_v0, %v561_v24  ;;  %v1281_v1 = vmax.f32 %v1277_v22, %v2603_v14 }
 0x149   :  { %v562_v20 = vsel %vm529_vm10, %v2570_v51, 0.0  ;;  %v632_v45 = vmax.f32 %v628_v40, %v629_v50  ;;  %v1244_v30 = vadd.f32 %v1243_v13, %v1213_v10  ;;  %v3049_v43 = vmov 0.0  }
 0x14a   :  { %v593_v44 = vadd.f32 %v592_v15, %v562_v20  ;;  %v1215_v8 = vsel %vm1182_vm0, -1e+30, %v3049_v43  ;;  %v1284_v25 = vmax.f32 %v1280_v60, %v1281_v1  ;;  %v563_v47 = vsel %vm530_vm13, %v2592_v57, 0.0 }
 0x14b   :  { %v634_v41 = vmax.f32 %v632_v45, %v633_v37  ;;  %v1245_v35 = vadd.f32 %v1244_v30, %v1214_v38  ;;  %v531_v37 = vld [vmem:[#allocation4] sm:$0x1] }
 0x14c   :  { %v594_v0 = vadd.f32 %v593_v44, %v563_v47  ;;  %v1286_v54 = vmax.f32 %v1284_v25, %v1285_v53 }
 0x14d   :  { %v635_v22 = vrot.slane %v634_v41, 4  ;;  %v1246_v24 = vadd.f32 %v1245_v35, %v1215_v8 }
 0x14e   :  { %v595_v14 = vrot.slane %v594_v0, 4  ;;  %v1287_v20 = vrot.slane %v1286_v54, 4 }
 0x14f   :  { %v636_v42 = vmax.f32 %v634_v41, %v635_v22  ;;  %v1247_v9 = vrot.slane %v1246_v24, 4 }
 0x150   :  { %v596_v63 = vadd.f32 %v595_v14, %v594_v0  ;;  %v1288_v41 = vmax.f32 %v1286_v54, %v1287_v20 }
 0x151   :  { %v637_v40 = vrot.slane %v636_v42, 2  ;;  %v1248_v13 = vadd.f32 %v1247_v9, %v1246_v24 }
 0x152   :  { %v597_v50 = vrot.slane %v596_v63, 2  ;;  %v1289_v47 = vrot.slane %v1288_v41, 2 }
 0x153   :  { %v638_v10 = vmax.f32 %v636_v42, %v637_v40  ;;  %v1249_v15 = vrot.slane %v1248_v13, 2  ;;  %v3072_v40 = vld [vmem:[#allocation33_spill] sm:$0xff] }
 0x154   :  { %v598_v60 = vadd.f32 %v597_v50, %v596_v63 }
 0x155   :  { %v639_v1 = vrot.slane %v638_v10, 1  ;;  %v1250_v53 = vadd.f32 %v1249_v15, %v1248_v13  ;;  %v3070_v13 = vld [vmem:[#allocation28_spill] sm:$0xff] }
 0x156   :  { %v599_v48 = vrot.slane %v598_v60, 1 }
 0x157   :  { %v640_v38 = vmax.f32 %v638_v10, %v639_v1  ;;  %v1251_v42 = vrot.slane %v1250_v53, 1 }
 0x158   :  { %v600_v45 = vadd.f32 %v599_v48, %v598_v60  ;;  %v1290_v48 = vmax.f32 %v1288_v41, %v1289_v47  ;;  %v3065_v47 = vld [vmem:[#allocation22_spill] sm:$0xff] }
 0x159   :  { %v2630_v30 = vmax.f32 %v2627_v21, %v640_v38  ;;  %v1252_v24 = vadd.f32 %v1251_v42, %v1250_v53 }
 0x15a   :  { %v601_v14 = vadd.f32 %v600_v45, %v531_v37  ;;  %v1291_v15 = vrot.slane %v1290_v48, 1 }
 0x15b   :  { %v2636_v63 = vrot.slane %v2630_v30, %v1952_v46  ;;  %788 = vst [vmem:[#allocation2] sm:$0x1] %v2630_v30 }
 0x15c   :  { %602 = vst [vmem:[#allocation4] sm:$0x1] %v601_v14  ;;  %v1292_v50 = vmax.f32 %v1290_v48, %v1291_v15  ;;  %v3061_v14 = vld [vmem:[#allocation18_spill] sm:$0xff] }
 0x15d   :  { %v653_v43 = vsub.f32 %v1975_v55, %v2636_v63  ;;  %v654_v8 = vsub.f32 %v1993_v62, %v2636_v63  ;;  %v655_v25 = vsub.f32 %v1965_v52, %v2636_v63  ;;  %v656_v35 = vsub.f32 %v1984_v59, %v2636_v63 }
 0x15e   :  { %v657_v0 = vsub.f32 %v2051_v19, %v2636_v63  ;;  %v658_v54 = vsub.f32 %v2074_v31, %v2636_v63  ;;  %v659_v22 = vsub.f32 %v2032_v12, %v2636_v63  ;;  %v660_v55 = vsub.f32 %v2066_v26, %v2636_v63 }
 0x15f   :  { %v661_v62 = vsub.f32 %v2138_v5, %v2636_v63  ;;  %v662_v52 = vsub.f32 %v2166_v23, %v2636_v63  ;;  %v663_v59 = vsub.f32 %v2122_v58, %v2636_v63  ;;  %v664_v19 = vsub.f32 %v2155_v11, %v2636_v63  ;;  %v3081_v58 = vld [vmem:[#allocation40_spill] sm:$0xff]  ;;  %v3082_v23 = vld [vmem:[#allocation38_spill] sm:$0xff] }
 0x160   :  { %v665_v31 = vsub.f32 %v2237_v61, %v2636_v63  ;;  %v666_v12 = vsub.f32 %v2262_v39, %v2636_v63  ;;  %v667_v26 = vsub.f32 %v2222_v49, %v2636_v63  ;;  %v685_v42 = vmul.f32 1.442695, %v653_v43 }
 0x161   :  { %v687_v44 = vmul.f32 1.442695, %v654_v8  ;;  %v689_v1 = vmul.f32 1.442695, %v655_v25  ;;  %v691_v38 = vmul.f32 1.442695, %v656_v35 }
 0x162   :  { %1699 = vpow2.f32 %v685_v42  ;;  %v693_v37 = vmul.f32 1.442695, %v657_v0  ;;  %v695_v53 = vmul.f32 1.442695, %v658_v54  ;;  %v2703_v10 = vld [vmem:[#allocation2] sm:$0x1] }
 0x163   :  { %v1183_v20 = vld [vmem:[#allocation4] sm:$0x1]  ;;  %1701 = vpow2.f32 %v687_v44  ;;  %3050 = vst [vmem:[#allocation41_spill] sm:$0xff] %v2703_v10  ;;  %v697_v45 = vmul.f32 1.442695, %v659_v22  ;;  %v2706_v8 = vmax.f32 %v2703_v10, %v1292_v50 }
 0x164   :  { %v1253_v60 = vadd.f32 %v1252_v24, %v1183_v20  ;;  %1703 = vpow2.f32 %v689_v1  ;;  %v699_v43 = vmul.f32 1.442695, %v660_v55  ;;  %v701_v44 = vmul.f32 1.442695, %v661_v62  ;;  %v3052_v24 = vld [vmem:[#allocation13_spill] sm:$0xff]  ;;  %v3071_v20 = vld [vmem:[#allocation31_spill] sm:$0xff] }
 0x165   :  { %1705 = vpow2.f32 %v691_v38  ;;  %3051 = vst [vmem:[#allocation42_spill] sm:$0xff] %v2706_v8  ;;  %v2712_v35 = vrot.slane %v2706_v8, %v1952_v46  ;;  %1440 = vst [vmem:[#allocation2] sm:$0x1] %v2706_v8  ;;  %v703_v22 = vmul.f32 1.442695, %v662_v52  ;;  %v3054_v46 = vld [vmem:[#allocation12_spill] sm:$0xff] }
 0x166   :  { %1254 = vst [vmem:[#allocation4] sm:$0x1] %v1253_v60  ;;  %1707 = vpow2.f32 %v693_v37  ;;  %v705_v62 = vmul.f32 1.442695, %v663_v59  ;;  %v3053_v60 = vld [vmem:[#allocation11_spill] sm:$0xff]  ;;  %v3056_v52 = vld [vmem:[#allocation17_spill] sm:$0xff] }
 0x167   :  { %1709 = vpow2.f32 %v695_v53  ;;  %v1305_v55 = vsub.f32 %v1977_v56, %v2712_v35  ;;  %v3055_v38 = vld [vmem:[#allocation15_spill] sm:$0xff]  ;;  %v3057_v56 = vld [vmem:[#allocation14_spill] sm:$0xff]  ;;  %v707_v59 = vmul.f32 1.442695, %v664_v19  ;;  %v709_v11 = vmul.f32 1.442695, %v665_v31 }
 0x168   :  { %1711 = vpow2.f32 %v697_v45  ;;  %v3062_v45 = vld [vmem:[#allocation20_spill] sm:$0xff]  ;;  %v3067_v37 = vld [vmem:[#allocation27_spill] sm:$0xff]  ;;  %v711_v61 = vmul.f32 1.442695, %v666_v12  ;;  %v713_v39 = vmul.f32 1.442695, %v667_v26  ;;  %v3085_v10 = vsub.f32 %v3052_v24, %v2712_v35 }
 0x169   :  { %1713 = vpow2.f32 %v699_v43  ;;  %v3058_v43 = vld [vmem:[#allocation16_spill] sm:$0xff]  ;;  %v3075_v1 = vld [vmem:[#allocation35_spill] sm:$0xff]  ;;  %v3077_v50 = vld [vmem:[#allocation34_spill] sm:$0xff] }
 0x16a   :  { %1715 = vpow2.f32 %v701_v44  ;;  %v3064_v44 = vld [vmem:[#allocation25_spill] sm:$0xff]  ;;  %v3066_v53 = vld [vmem:[#allocation24_spill] sm:$0xff]  ;;  %v1339_v9 = vmul.f32 1.442695, %v3085_v10  ;;  %v3089_v10 = vsub.f32 %v3054_v46, %v2712_v35 }
 0x16b   :  { %1717 = vpow2.f32 %v703_v22  ;;  %v3069_v22 = vld [vmem:[#allocation26_spill] sm:$0xff] }
 0x16c   :  { %v1700_v41 = vpop.eup %1699  ;;  %1719 = vpow2.f32 %v705_v62  ;;  %v3074_v62 = vld [vmem:[#allocation32_spill] sm:$0xff] }
 0x16d   :  { %v1702_v25 = vpop.eup %1701  ;;  %1721 = vpow2.f32 %v707_v59 }
 0x16e   :  { %v749_v0 = vadd.f32 %v1702_v25, %v1700_v41  ;;  %v1704_v54 = vpop.eup %1703  ;;  %v3059_v25 = vld [vmem:[#allocation19_spill] sm:$0xff]  ;;  %1723 = vpow2.f32 %v709_v11  ;;  %v3080_v11 = vsub.f32 %v2252_v4, %v2636_v63 }
 0x16f   :  { %v1706_v48 = vpop.eup %1705  ;;  %1725 = vpow2.f32 %v711_v61  ;;  %v3084_v61 = vsub.f32 %v2358_v16, %v2636_v63  ;;  %v3087_v16 = vsub.f32 %v3053_v60, %v2712_v35 }
 0x170   :  { %v750_v15 = vadd.f32 %v1704_v54, %v749_v0  ;;  %v1708_v0 = vpop.eup %1707  ;;  %v3060_v54 = vld [vmem:[#allocation21_spill] sm:$0xff]  ;;  %v715_v59 = vmul.f32 1.442695, %v3080_v11  ;;  %1727 = vpow2.f32 %v713_v39  ;;  %v1337_v11 = vmul.f32 1.442695, %v1305_v55 }
 0x171   :  { %v1710_v41 = vpop.eup %1709  ;;  %v3086_v39 = vsub.f32 %v2314_v34, %v2636_v63  ;;  %v3088_v55 = vsub.f32 %v2347_v3, %v2636_v63 }
 0x172   :  { %v751_v42 = vadd.f32 %v1706_v48, %v750_v15  ;;  %v3063_v15 = vld [vmem:[#allocation23_spill] sm:$0xff]  ;;  %v1712_v48 = vpop.eup %1711  ;;  %1729 = vpow2.f32 %v715_v59 }
 0x173   :  { %v723_v59 = vmul.f32 1.442695, %v3088_v55  ;;  %v3097_v55 = vsub.f32 %v3058_v43, %v2712_v35 }
 0x174   :  { %v752_v19 = vadd.f32 %v1708_v0, %v751_v42  ;;  %v3068_v42 = vld [vmem:[#allocation29_spill] sm:$0xff]  ;;  %v1714_v0 = vpop.eup %1713 }
 0x175   :  { %v1716_v8 = vpop.eup %1715 }
 0x176   :  { %v753_v31 = vadd.f32 %v1710_v41, %v752_v19  ;;  %v3073_v41 = vld [vmem:[#allocation30_spill] sm:$0xff]  ;;  %v719_v19 = vmul.f32 1.442695, %v3084_v61 }
 0x178   :  { %v754_v12 = vadd.f32 %v1712_v48, %v753_v31 }
 0x17a   :  { %v755_v49 = vadd.f32 %v1714_v0, %v754_v12  ;;  %v1718_v0 = vpop.eup %1717  ;;  %v3083_v12 = vsub.f32 %v2330_v2, %v2636_v63  ;;  %v721_v2 = vmul.f32 1.442695, %v3086_v39 }
 0x17b   :  { %v1720_v4 = vpop.eup %1719 }
 0x17c   :  { %v756_v5 = vadd.f32 %v1716_v8, %v755_v49  ;;  %v717_v48 = vmul.f32 1.442695, %v3083_v12  ;;  %v1722_v8 = vpop.eup %1721 }
 0x17e   :  { %v757_v31 = vadd.f32 %v1718_v0, %v756_v5  ;;  %1731 = vpow2.f32 %v717_v48  ;;  %v1341_v5 = vmul.f32 1.442695, %v3087_v16  ;;  %v1724_v0 = vpop.eup %1723  ;;  %v1343_v48 = vmul.f32 1.442695, %v3089_v10 }
 0x17f   :  { %1733 = vpow2.f32 %v719_v19  ;;  %v1726_v34 = vpop.eup %1725  ;;  %v3090_v19 = vsub.f32 %v2429_v36, %v2636_v63  ;;  %v3096_v16 = vsub.f32 %v2443_v28, %v2636_v63  ;;  %v3099_v28 = vsub.f32 %v3059_v25, %v2712_v35 }
 0x180   :  { %v758_v26 = vadd.f32 %v1720_v4, %v757_v31  ;;  %1735 = vpow2.f32 %v1337_v11  ;;  %v3091_v31 = vsub.f32 %v3055_v38, %v2712_v35  ;;  %v1728_v12 = vpop.eup %1727  ;;  %v3093_v4 = vsub.f32 %v3056_v52, %v2712_v35 }
 0x181   :  { %1737 = vpow2.f32 %v1339_v9  ;;  %v3092_v9 = vsub.f32 %v2453_v6, %v2636_v63  ;;  %v1730_v36 = vpop.eup %1729  ;;  %v3102_v25 = vsub.f32 %v2498_v18, %v2636_v63  ;;  %v3105_v18 = vsub.f32 %v3062_v45, %v2712_v35 }
 0x182   :  { %v759_v49 = vadd.f32 %v1722_v8, %v758_v26  ;;  %1739 = vpow2.f32 %v721_v2  ;;  %v725_v26 = vmul.f32 1.442695, %v3090_v19  ;;  %v1345_v3 = vmul.f32 1.442695, %v3091_v31 }
 0x183   :  { %1741 = vpow2.f32 %v1341_v5  ;;  %v727_v61 = vmul.f32 1.442695, %v3092_v9  ;;  %v1347_v11 = vmul.f32 1.442695, %v3093_v4  ;;  %v3094_v8 = vsub.f32 %v2414_v33, %v2636_v63 }
 0x184   :  { %v760_v24 = vadd.f32 %v1724_v0, %v759_v49  ;;  %1743 = vpow2.f32 %v723_v59  ;;  %v3095_v2 = vsub.f32 %v3057_v56, %v2712_v35  ;;  %v731_v5 = vmul.f32 1.442695, %v3096_v16 }
 0x185   :  { %1745 = vpow2.f32 %v1343_v48  ;;  %v729_v39 = vmul.f32 1.442695, %v3094_v8  ;;  %v1351_v33 = vmul.f32 1.442695, %v3097_v55  ;;  %v3108_v45 = vsub.f32 %v2601_v7, %v2636_v63 }
 0x186   :  { %v761_v60 = vadd.f32 %v1726_v34, %v760_v24  ;;  %1747 = vpow2.f32 %v725_v26  ;;  %v1349_v49 = vmul.f32 1.442695, %v3095_v2  ;;  %v3098_v24 = vsub.f32 %v2511_v27, %v2636_v63 }
 0x187   :  { %1749 = vpow2.f32 %v1345_v3  ;;  %v1353_v34 = vmul.f32 1.442695, %v3099_v28  ;;  %v3100_v26 = vsub.f32 %v2535_v32, %v2636_v63  ;;  %v3101_v27 = vsub.f32 %v3060_v54, %v2712_v35 }
 0x188   :  { %v762_v46 = vadd.f32 %v1728_v12, %v761_v60  ;;  %v1732_v6 = vpop.eup %1731  ;;  %1751 = vpow2.f32 %v727_v61  ;;  %v733_v56 = vmul.f32 1.442695, %v3098_v24  ;;  %v737_v61 = vmul.f32 1.442695, %v3102_v25 }
 0x189   :  { %v1734_v52 = vpop.eup %1733  ;;  %1753 = vpow2.f32 %v1347_v11  ;;  %v735_v43 = vmul.f32 1.442695, %v3100_v26  ;;  %v1355_v12 = vmul.f32 1.442695, %v3101_v27  ;;  %v3103_v32 = vsub.f32 %v3061_v14, %v2712_v35 }
 0x18a   :  { %v763_v38 = vadd.f32 %v1730_v36, %v762_v46  ;;  %v1736_v59 = vpop.eup %1735  ;;  %1755 = vpow2.f32 %v729_v39  ;;  %v3104_v54 = vsub.f32 %v2524_v29, %v2636_v63  ;;  %v3106_v14 = vsub.f32 %v2584_v17, %v2636_v63 }
 0x18b   :  { %v1738_v10 = vpop.eup %1737  ;;  %1757 = vpow2.f32 %v1349_v49  ;;  %v1357_v36 = vmul.f32 1.442695, %v3103_v32  ;;  %v3107_v29 = vsub.f32 %v3063_v15, %v2712_v35  ;;  %v743_v24 = vmul.f32 1.442695, %v3108_v45 }
 0x18c   :  { %v764_v0 = vadd.f32 %v1732_v6, %v763_v38  ;;  %v1740_v19 = vpop.eup %1739  ;;  %1759 = vpow2.f32 %v731_v5  ;;  %v1401_v60 = vadd.f32 %v1738_v10, %v1736_v59  ;;  %v739_v39 = vmul.f32 1.442695, %v3104_v54 }
 0x18d   :  { %v1742_v31 = vpop.eup %1741  ;;  %1761 = vpow2.f32 %v1351_v33  ;;  %v1359_v6 = vmul.f32 1.442695, %v3105_v18  ;;  %v741_v5 = vmul.f32 1.442695, %v3106_v14  ;;  %v1361_v33 = vmul.f32 1.442695, %v3107_v29 }
 0x18e   :  { %v765_v48 = vadd.f32 %v1734_v52, %v764_v0  ;;  %v1744_v9 = vpop.eup %1743  ;;  %1763 = vpow2.f32 %v733_v56  ;;  %v1402_v46 = vadd.f32 %v1742_v31, %v1401_v60  ;;  %v3109_v17 = vsub.f32 %v3064_v44, %v2712_v35 }
 0x18f   :  { %v1746_v4 = vpop.eup %1745  ;;  %1765 = vpow2.f32 %v1353_v34  ;;  %v3110_v15 = vsub.f32 %v2570_v51, %v2636_v63  ;;  %v3111_v7 = vsub.f32 %v3065_v47, %v2712_v35  ;;  %v3112_v44 = vsub.f32 %v2592_v57, %v2636_v63 }
 0x190   :  { %v766_v3 = vadd.f32 %v1740_v19, %v765_v48  ;;  %v1748_v8 = vpop.eup %1747  ;;  %1767 = vpow2.f32 %v735_v43  ;;  %v1403_v38 = vadd.f32 %v1746_v4, %v1402_v46  ;;  %v1363_v28 = vmul.f32 1.442695, %v3109_v17 }
 0x191   :  { %v1750_v2 = vpop.eup %1749  ;;  %1769 = vpow2.f32 %v1355_v12  ;;  %v745_v19 = vmul.f32 1.442695, %v3110_v15  ;;  %v1365_v31 = vmul.f32 1.442695, %v3111_v7  ;;  %v747_v27 = vmul.f32 1.442695, %v3112_v44 }
 0x192   :  { %v767_v11 = vadd.f32 %v1744_v9, %v766_v3  ;;  %v1752_v16 = vpop.eup %1751  ;;  %1771 = vpow2.f32 %v737_v61  ;;  %v1404_v52 = vadd.f32 %v1750_v2, %v1403_v38  ;;  %v3113_v51 = vsub.f32 %v3066_v53, %v2712_v35 }
 0x193   :  { %v1754_v0 = vpop.eup %1753  ;;  %1773 = vpow2.f32 %v1357_v36  ;;  %v3114_v32 = vsub.f32 %v3067_v37, %v2712_v35  ;;  %v3115_v53 = vsub.f32 %v3068_v42, %v2712_v35  ;;  %v3118_v29 = vsub.f32 %v2627_v21, %v2630_v30 }
 0x194   :  { %v768_v49 = vadd.f32 %v1748_v8, %v767_v11  ;;  %v1756_v59 = vpop.eup %1755  ;;  %1775 = vpow2.f32 %v739_v39  ;;  %v1405_v56 = vadd.f32 %v1754_v0, %v1404_v52  ;;  %v1367_v61 = vmul.f32 1.442695, %v3113_v51 }
 0x195   :  { %v1758_v10 = vpop.eup %1757  ;;  %1777 = vpow2.f32 %v1359_v6  ;;  %v1369_v36 = vmul.f32 1.442695, %v3114_v32  ;;  %v1371_v39 = vmul.f32 1.442695, %v3115_v53  ;;  %v3116_v6 = vsub.f32 %v3069_v22, %v2712_v35  ;;  %v3127_v53 = vld [vmem:[#allocation36_spill] sm:$0xff] }
 0x196   :  { %v769_v55 = vadd.f32 %v1752_v16, %v768_v49  ;;  %v1760_v34 = vpop.eup %1759  ;;  %1779 = vpow2.f32 %v741_v5  ;;  %v1406_v26 = vadd.f32 %v1758_v10, %v1405_v56  ;;  %v3117_v0 = vsub.f32 %v3070_v13, %v2712_v35 }
 0x197   :  { %v1762_v43 = vpop.eup %1761  ;;  %1781 = vpow2.f32 %v1361_v33  ;;  %v1373_v37 = vmul.f32 1.442695, %v3116_v6  ;;  %v644_v33 = vmul.f32 1.442695, %v3118_v29  ;;  %v3119_v22 = vsub.f32 %v3071_v20, %v2712_v35 }
 0x198   :  { %v770_v48 = vadd.f32 %v1756_v59, %v769_v55  ;;  %v1764_v3 = vpop.eup %1763  ;;  %1783 = vpow2.f32 %v743_v24  ;;  %v1407_v12 = vadd.f32 %v1762_v43, %v1406_v26  ;;  %v1375_v55 = vmul.f32 1.442695, %v3117_v0 }
 0x199   :  { %v1766_v9 = vpop.eup %1765  ;;  %1785 = vpow2.f32 %v1363_v28  ;;  %v1377_v56 = vmul.f32 1.442695, %v3119_v22  ;;  %v3120_v13 = vsub.f32 %v3072_v40, %v2712_v35  ;;  %v3121_v26 = vsub.f32 %v3073_v41, %v2712_v35 }
 0x19a   :  { %v771_v60 = vadd.f32 %v1760_v34, %v770_v48  ;;  %v1768_v46 = vpop.eup %1767  ;;  %1787 = vpow2.f32 %v745_v19  ;;  %v1408_v4 = vadd.f32 %v1766_v9, %v1407_v12  ;;  %v3123_v12 = vsub.f32 %v3075_v1, %v2712_v35 }
 0x19b   :  { %v1770_v11 = vpop.eup %1769  ;;  %1789 = vpow2.f32 %v1365_v31  ;;  %v1379_v34 = vmul.f32 1.442695, %v3120_v13  ;;  %v1381_v20 = vmul.f32 1.442695, %v3121_v26  ;;  %v3122_v31 = vsub.f32 %v3074_v62, %v2712_v35  ;;  %v3134_v26 = vld [vmem:[#allocation42_spill] sm:$0xff] }
 0x19c   :  { %v772_v25 = vadd.f32 %v1764_v3, %v771_v60  ;;  %v1772_v57 = vpop.eup %1771  ;;  %1791 = vpow2.f32 %v747_v27  ;;  %v1409_v63 = vadd.f32 %v1770_v11, %v1408_v4  ;;  %v1385_v9 = vmul.f32 1.442695, %v3123_v12 }
 0x19d   :  { %v1774_v8 = vpop.eup %1773  ;;  %1793 = vpow2.f32 %v1367_v61  ;;  %v1383_v3 = vmul.f32 1.442695, %v3122_v31  ;;  %v3124_v61 = vld [vmem:[#allocation37_spill] sm:$0xff]  ;;  %v3126_v32 = vsub.f32 %v3077_v50, %v2712_v35  ;;  %v1336_v0 = vsub.f32 -1e+30, %v2712_v35 }
 0x19e   :  { %v773_v47 = vadd.f32 %v1768_v46, %v772_v25  ;;  %v1776_v38 = vpop.eup %1775  ;;  %v1410_v2 = vadd.f32 %v1774_v8, %v1409_v63  ;;  %1795 = vpow2.f32 %v1369_v36  ;;  %v3125_v46 = vsub.f32 %v3124_v61, %v2712_v35  ;;  %v642_v63 = vld [vmem:[#allocation3] sm:$0x1] }
 0x19f   :  { %v1778_v49 = vpop.eup %1777  ;;  %1797 = vpow2.f32 %v1371_v39  ;;  %v1389_v36 = vmul.f32 1.442695, %v3126_v32  ;;  %v3128_v39 = vsub.f32 %v3127_v53, %v2712_v35  ;;  %v1833_v32 = vld [vmem:[%s2954_s2] sm:$0x1] }
 0x1a0   :  { %v774_v54 = vadd.f32 %v1772_v57, %v773_v47  ;;  %v1780_v16 = vpop.eup %1779  ;;  %v1411_v14 = vadd.f32 %v1778_v49, %v1410_v2  ;;  %1799 = vpow2.f32 %v1373_v37  ;;  %v1387_v4 = vmul.f32 1.442695, %v3125_v46  ;;  %v3129_v37 = vld [vmem:[#allocation39_spill] sm:$0xff] }
 0x1a1   :  { %v1782_v5 = vpop.eup %1781  ;;  %1801 = vpow2.f32 %v1375_v55  ;;  %v3131_v55 = vsub.f32 %v3081_v58, %v2712_v35  ;;  %vm1448_vm1 = vcmp.ne.s32.totalorder %v1833_v32, 4294967196 }
 0x1a2   :  { %v775_v18 = vadd.f32 %v1776_v38, %v774_v54  ;;  %v1784_v42 = vpop.eup %1783  ;;  %v1412_v59 = vadd.f32 %v1782_v5, %v1411_v14  ;;  %1803 = vpow2.f32 %v644_v33  ;;  %v1391_v38 = vmul.f32 1.442695, %v3128_v39 }
 0x1a3   :  { %v1786_v45 = vpop.eup %1785  ;;  %1805 = vpow2.f32 %v1377_v56  ;;  %v1399_v56 = vmul.f32 1.442695, %v1336_v0 }
 0x1a4   :  { %v776_v52 = vadd.f32 %v1780_v16, %v775_v18  ;;  %v1788_v10 = vpop.eup %1787  ;;  %v1413_v48 = vadd.f32 %v1786_v45, %v1412_v59  ;;  %1807 = vpow2.f32 %v1379_v34  ;;  %v3130_v16 = vsub.f32 %v3129_v37, %v2712_v35 }
 0x1a5   :  { %v1790_v17 = vpop.eup %1789  ;;  %1809 = vpow2.f32 %v1381_v20  ;;  %v3132_v59 = vsub.f32 %v3082_v23, %v2712_v35 }
 0x1a6   :  { %v777_v24 = vadd.f32 %v1784_v42, %v776_v52  ;;  %v1792_v15 = vpop.eup %1791  ;;  %v1414_v21 = vadd.f32 %v1790_v17, %v1413_v48  ;;  %1811 = vpow2.f32 %v1383_v3  ;;  %v1393_v50 = vmul.f32 1.442695, %v3130_v16 }
 0x1a7   :  { %v1794_v30 = vpop.eup %1793  ;;  %1813 = vpow2.f32 %v1385_v9  ;;  %v1395_v42 = vmul.f32 1.442695, %v3131_v55  ;;  %v1397_v45 = vmul.f32 1.442695, %v3132_v59 }
 0x1a8   :  { %v778_v28 = vadd.f32 %v1788_v10, %v777_v24  ;;  %v1415_v43 = vadd.f32 %v1794_v30, %v1414_v21  ;;  %v1796_v60 = vpop.eup %1795  ;;  %1815 = vpow2.f32 %v1387_v4 }
 0x1a9   :  { %v1798_v44 = vpop.eup %1797  ;;  %1817 = vpow2.f32 %v1389_v36  ;;  %v1449_v36 = vld [vmem:[#allocation4] sm:$0x1] }
 0x1aa   :  { %v779_v19 = vadd.f32 %v1792_v15, %v778_v28  ;;  %v1416_v40 = vadd.f32 %v1796_v60, %v1415_v43  ;;  %v1800_v51 = vpop.eup %1799  ;;  %1819 = vpow2.f32 %v1391_v38 }
 0x1ab   :  { %v1802_v47 = vpop.eup %1801  ;;  %1821 = vpow2.f32 %v1393_v50 }
 0x1ac   :  { %v780_v7 = vrot.slane %v779_v19, 4  ;;  %v1417_v25 = vadd.f32 %v1798_v44, %v1416_v40  ;;  %v1804_v57 = vpop.eup %1803  ;;  %1823 = vpow2.f32 %v1395_v42 }
 0x1ad   :  { %v1806_v8 = vpop.eup %1805  ;;  %v646_v6 = vmul.f32 %v1804_v57, %v642_v63  ;;  %1825 = vpow2.f32 %v1397_v45 }
 0x1ae   :  { %v781_v27 = vadd.f32 %v780_v7, %v779_v19  ;;  %v1418_v11 = vadd.f32 %v1800_v51, %v1417_v25  ;;  %v1808_v49 = vpop.eup %1807  ;;  %1827 = vpow2.f32 %v1399_v56  ;;  %v3133_v19 = vld [vmem:[#allocation41_spill] sm:$0xff] }
 0x1af   :  { %v1810_v5 = vpop.eup %1809  ;;  %v3135_v23 = vsub.f32 %v3133_v19, %v3134_v26 }
 0x1b0   :  { %v782_v41 = vrot.slane %v781_v27, 2  ;;  %v1419_v1 = vadd.f32 %v1802_v47, %v1418_v11  ;;  %v1812_v33 = vpop.eup %1811  ;;  %v1443_v47 = vld [vmem:[#allocation2] sm:$0x1] }
 0x1b1   :  { %v1814_v22 = vpop.eup %1813  ;;  %v1296_v35 = vmul.f32 1.442695, %v3135_v23 }
 0x1b2   :  { %v783_v62 = vadd.f32 %v782_v41, %v781_v27  ;;  %v1420_v2 = vadd.f32 %v1806_v8, %v1419_v1  ;;  %v1816_v48 = vpop.eup %1815 }
 0x1b3   :  { %v1818_v28 = vpop.eup %1817  ;;  %1829 = vpow2.f32 %v1296_v35 }
 0x1b4   :  { %v784_v54 = vrot.slane %v783_v62, 1  ;;  %v1421_v14 = vadd.f32 %v1808_v49, %v1420_v2  ;;  %v1820_v13 = vpop.eup %1819 }
 0x1b5   :  { %v1822_v15 = vpop.eup %1821 }
 0x1b6   :  { %v785_v18 = vadd.f32 %v784_v54, %v783_v62  ;;  %v1422_v29 = vadd.f32 %v1810_v5, %v1421_v14  ;;  %v1824_v30 = vpop.eup %1823 }
 0x1b7   :  { %v1826_v43 = vpop.eup %1825 }
 0x1b8   :  { %v786_v52 = vadd.f32 %v785_v18, %v646_v6  ;;  %v1423_v24 = vadd.f32 %v1812_v33, %v1422_v29  ;;  %v1828_v7 = vpop.eup %1827 }
 0x1ba   :  { %787 = vst [vmem:[#allocation3] sm:$0x1] %v786_v52  ;;  %v1424_v10 = vadd.f32 %v1814_v22, %v1423_v24 }
 0x1bc   :  { %v1425_v17 = vadd.f32 %v1816_v48, %v1424_v10 }
 0x1bd   :  { %v1830_v9 = vpop.eup %1829 }
 0x1be   :  { %v1426_v58 = vadd.f32 %v1818_v28, %v1425_v17 }
 0x1c0   :  { %v1427_v34 = vadd.f32 %v1820_v13, %v1426_v58 }
 0x1c1   :  { %v1294_v27 = vld [vmem:[#allocation3] sm:$0x1] }
 0x1c2   :  { %v1428_v21 = vadd.f32 %v1822_v15, %v1427_v34  ;;  %v1298_v25 = vmul.f32 %v1830_v9, %v1294_v27 }
 0x1c4   :  { %v1429_v20 = vadd.f32 %v1824_v30, %v1428_v21 }
 0x1c6   :  { %v1430_v60 = vadd.f32 %v1826_v43, %v1429_v20 }
 0x1c8   :  { %v1431_v31 = vadd.f32 %v1828_v7, %v1430_v60 }
 0x1ca   :  { %v1432_v3 = vrot.slane %v1431_v31, 4 }
 0x1cc   :  { %v1433_v40 = vadd.f32 %v1432_v3, %v1431_v31 }
 0x1ce   :  { %v1434_v44 = vrot.slane %v1433_v40, 2 }
 0x1d0   :  { %v1435_v12 = vadd.f32 %v1434_v44, %v1433_v40 }
 0x1d2   :  { %v1436_v51 = vrot.slane %v1435_v12, 1 }
 0x1d4   :  { %v1437_v41 = vadd.f32 %v1436_v51, %v1435_v12 }
 0x1d6   :  { %v1438_v61 = vadd.f32 %v1437_v41, %v1298_v25 }
 0x1d8   :  { %1439 = vst [vmem:[#allocation3] sm:$0x1] %v1438_v61 }
 0x1df   :  { %v1444_v46 = vld [vmem:[#allocation3] sm:$0x1] }
 0x1e0   :  { %1831 = vlog2.f32 %v1444_v46 }
 0x1ea   :  { %v1832_v4 = vpop.eup %1831 }
 0x1eb   :  { %v1446_v11 = vmul.f32 0.6931472, %v1832_v4 }
 0x1ed   :  { %v1447_v62 = vadd.f32 %v1446_v11, %v1443_v47 }
 0x1ef   :  { %v1450_v57 = vsub.f32 %v1447_v62, %v1449_v36 }
 0x1f1   :  { %v1451_v63 = vsel %vm1448_vm1, %v1450_v57, 0.0 }
 0x1f2   :  { %1452 = vst [vmem:[#allocation8] sm:$0x1] %v1451_v63 }
 0x1f3   :  { %1867 = shalt.err (!%p1864_p12)
}
 0x1f4   :  { %s1868_s24 = scalar_lea.hbm %s2955_s3, 16 }
 0x1f5   :  { %p1869_p13 = scmp.ne.s32.totalorder %s2955_s3, %s1868_s24  ;;  %p1872_p0 = scmp.lt.u32.totalorder %s1868_s24, %s2955_s3 }
 0x1f7   :  { %p1874_p1 = pnand %p1872_p0, %p1869_p13 }
 0x1f9   :  { %1877 = shalt.err (!%p1874_p1)
}
 0x1fa   :  { %1462 = dma.vmem_to_hbm [thread:$0]  %s1460_s17, 16, %s2955_s3, [#allocation7]  }
 0x1fb   :  { %1880 = dma.done.wait [#allocation7], 16  }
 0x1fc   :  { %1881 = vsyncadd [#allocation7], 4294967280 }
 0x1fd   :  { %1466 = vsyncpa [#allocation6], 1 }
 0x1fe   :  { %1467 = vsyncpa [#allocation7], 1 }

</bundles_post_ra>
